<compile_context>
chip_gen: v7x
topology: tpu7x:2x2x1
jax: 0.10.0
libtpu: 0.0.40
codegen_flags: <defaults>
</compile_context>

<pallas_src>
import math

import jax
import jax.numpy as jnp
import numpy as np
from jax.experimental import pallas as pl
from jax.experimental.pallas import tpu as pltpu

# ---- small config consistent with DecodeLayer(head, d_model) ----
HEAD = 4
D_MODEL = 32
D_K = D_MODEL // HEAD
B = 2
T = 8   # target sequence length
S = 8   # memory (source) sequence length
LN_EPS = 1e-5
NEG_BIG = -1e30


def decode_layer_kernel(tgt_ref, mem_ref, tb_ref, mb_ref,
                        wqkv1_ref, bqkv1_ref, wq2_ref, bq2_ref,
                        wkv2_ref, bkv2_ref, wf1_ref, bf1_ref,
                        wf2_ref, bf2_ref, ln_ref, o_ref):
    Bn, Tn, Dn = tgt_ref.shape
    Sn = mem_ref.shape[1]
    BT = Bn * Tn

    tgt2 = tgt_ref[...].reshape(BT, Dn)          # (B*T, D)
    mem2 = mem_ref[...].reshape(Bn * Sn, Dn)     # (B*S, D)
    tbias = tb_ref[...]                          # (B, T, T) additive 0/-1e30
    mbias = mb_ref[...]                          # (B, T, S)

    inv_sqrt_dk = 1.0 / math.sqrt(D_K)

    def linear(x, w_ref, b_ref):
        return (jnp.dot(x, w_ref[...], preferred_element_type=jnp.float32)
                + b_ref[...])

    def layernorm(x, row):
        mu = jnp.mean(x, axis=-1, keepdims=True)
        var = jnp.mean((x - mu) ** 2, axis=-1, keepdims=True)
        xn = (x - mu) * jax.lax.rsqrt(var + LN_EPS)
        return xn * ln_ref[row:row + 1, :] + ln_ref[row + 1:row + 2, :]

    def attn_heads(q3, k3, v3, bias):
        # q3: (B, Tq, D)   k3, v3: (B, Tk, D)   bias: (B, Tq, Tk)
        outs = []
        for h in range(HEAD):                    # static unroll, HEAD = 4
            lo, hi = h * D_K, (h + 1) * D_K
            s = jnp.einsum('btd,bsd->bts', q3[..., lo:hi], k3[..., lo:hi],
                           preferred_element_type=jnp.float32) * inv_sqrt_dk
            s = s + bias
            m = jnp.max(s, axis=-1, keepdims=True)
            e = jnp.exp(s - m)
            p = e * pl.reciprocal(jnp.sum(e, axis=-1, keepdims=True),
                                  approx=True)
            outs.append(jnp.einsum('bts,bsd->btd', p, v3[..., lo:hi],
                                   preferred_element_type=jnp.float32))
        return jnp.concatenate(outs, axis=-1)    # (B, Tq, D)

    # SubLayerConnection[0]: tgt + LayerNorm(MHA1(tgt, tgt, tgt, tgt_mask))
    qkv = linear(tgt2, wqkv1_ref, bqkv1_ref).reshape(Bn, Tn, 3 * Dn)
    a1 = attn_heads(qkv[..., :Dn], qkv[..., Dn:2 * Dn], qkv[..., 2 * Dn:],
                    tbias)
    x = tgt2 + layernorm(a1.reshape(BT, Dn), 0)

    # SubLayerConnection[1]: x + LayerNorm(MHA2(x, mem, mem, mem_mask))
    q2 = linear(x, wq2_ref, bq2_ref).reshape(Bn, Tn, Dn)
    kv = linear(mem2, wkv2_ref, bkv2_ref).reshape(Bn, Sn, 2 * Dn)
    a2 = attn_heads(q2, kv[..., :Dn], kv[..., Dn:], mbias)
    x = x + layernorm(a2.reshape(BT, Dn), 2)

    # SubLayerConnection[2]: x + LayerNorm(FF(x)),  FF = Lin2(relu(Lin1(x)))
    h1 = jnp.maximum(linear(x, wf1_ref, bf1_ref), 0.0)
    ff = linear(h1, wf2_ref, bf2_ref)
    x = x + layernorm(ff, 4)

    o_ref[...] = x.astype(o_ref.dtype)           # (B*T, D)


def decode_layer_pallas(tgt, mem, tgt_mask, mem_mask, params):
    Bn, Tn, Dn = tgt.shape
    Sn = mem.shape[1]

    # Additive mask biases (0 where attended, -1e30 where masked).
    tbias = jnp.where(tgt_mask == 0.0, jnp.float32(NEG_BIG),
                      jnp.float32(0.0)).astype(jnp.float32)
    mbias = jnp.where(mem_mask == 0.0, jnp.float32(NEG_BIG),
                      jnp.float32(0.0)).astype(jnp.float32)

    inputs = (tgt, mem, tbias, mbias,
              params['w_qkv1'], params['b_qkv1'],
              params['w_q2'], params['b_q2'],
              params['w_kv2'], params['b_kv2'],
              params['w_f1'], params['b_f1'],
              params['w_f2'], params['b_f2'],
              params['ln'])

    def full_spec(a):
        if a.ndim == 2:
            return pl.BlockSpec(a.shape, lambda i: (0, 0))
        elif a.ndim == 3:
            return pl.BlockSpec(a.shape, lambda i: (0, 0, 0))
        raise ValueError(f"unexpected rank {a.ndim}")

    out = pl.pallas_call(
        decode_layer_kernel,
        out_shape=jax.ShapeDtypeStruct((Bn * Tn, Dn), jnp.float32),
        grid=(1,),                                   # single step: batch folded
        in_specs=[full_spec(a) for a in inputs],
        out_specs=pl.BlockSpec((Bn * Tn, Dn), lambda i: (0, 0)),
        compiler_params=pltpu.CompilerParams(
            dimension_semantics=("arbitrary",)),
    )(*inputs)
    return out.reshape(Bn, Tn, Dn)


# ---------------- deterministic parameter init (PyTorch-Linear-style) -------
def _linear_init(key, fan_in, fan_out):
    bound = 1.0 / math.sqrt(fan_in)
    kw, kb = jax.random.split(key)
    W = jax.random.uniform(kw, (fan_in, fan_out), jnp.float32, -bound, bound)
    b = jax.random.uniform(kb, (fan_out,), jnp.float32, -bound, bound)
    return W, b


def init_params(key):
    def mha_weights(k):
        comps = []
        for kk in jax.random.split(k, 3):            # q, k, v components
            hk = jax.random.split(kk, HEAD)          # independent per-head Linear
            Ws, bs = zip(*[_linear_init(h, D_MODEL, D_K) for h in hk])
            comps.append((jnp.concatenate(Ws, axis=1),      # (D, D)
                          jnp.concatenate(bs, axis=0)))     # (D,)
        (Wq, bq), (Wk, bk), (Wv, bv) = comps
        return Wq, bq, Wk, bk, Wv, bv

    k1, k2, kf1, kf2 = jax.random.split(key, 4)
    Wq1, bq1, Wk1, bk1, Wv1, bv1 = mha_weights(k1)
    Wq2, bq2, Wk2, bk2, Wv2, bv2 = mha_weights(k2)
    Wf1, bf1 = _linear_init(kf1, D_MODEL, D_MODEL)
    Wf2, bf2 = _linear_init(kf2, D_MODEL, D_MODEL)
    ln_g = jnp.ones((D_MODEL,), jnp.float32)
    ln_b = jnp.zeros((D_MODEL,), jnp.float32)
    return dict(
        w_qkv1=jnp.concatenate([Wq1, Wk1, Wv1], axis=1),        # (D, 3D)
        b_qkv1=jnp.concatenate([bq1, bk1, bv1])[None, :],       # (1, 3D)
        w_q2=Wq2,                                               # (D, D)
        b_q2=bq2[None, :],                                      # (1, D)
        w_kv2=jnp.concatenate([Wk2, Wv2], axis=1),              # (D, 2D)
        b_kv2=jnp.concatenate([bk2, bv2])[None, :],             # (1, 2D)
        w_f1=Wf1, b_f1=bf1[None, :],
        w_f2=Wf2, b_f2=bf2[None, :],
        ln=jnp.stack([ln_g, ln_b, ln_g, ln_b, ln_g, ln_b], 0),  # (6, D)
    )


# ---------------- pure-JAX reference (for correctness check) ----------------
def decode_layer_ref(tgt, mem, tmask, mmask, p):
    def ln(x, g, b):
        mu = x.mean(-1, keepdims=True)
        var = ((x - mu) ** 2).mean(-1, keepdims=True)
        return (x - mu) / jnp.sqrt(var + LN_EPS) * g + b

    def attn_heads(q, k, v, mask):
        outs = []
        for h in range(HEAD):
            lo, hi = h * D_K, (h + 1) * D_K
            s = jnp.einsum('btd,bsd->bts', q[..., lo:hi],
                           k[..., lo:hi]) / math.sqrt(D_K)
            s = jnp.where(mask == 0.0, -jnp.inf, s)
            pr = jax.nn.softmax(s, axis=-1)
            outs.append(jnp.einsum('bts,bsd->btd', pr, v[..., lo:hi]))
        return jnp.concatenate(outs, axis=-1)

    qkv = tgt @ p['w_qkv1'] + p['b_qkv1']
    a1 = attn_heads(qkv[..., :D_MODEL], qkv[..., D_MODEL:2 * D_MODEL],
                    qkv[..., 2 * D_MODEL:], tmask)
    x = tgt + ln(a1, p['ln'][0], p['ln'][1])

    q = x @ p['w_q2'] + p['b_q2']
    kv = mem @ p['w_kv2'] + p['b_kv2']
    a2 = attn_heads(q, kv[..., :D_MODEL], kv[..., D_MODEL:], mmask)
    x = x + ln(a2, p['ln'][2], p['ln'][3])

    h1 = jnp.maximum(x @ p['w_f1'] + p['b_f1'], 0.0)
    ff = h1 @ p['w_f2'] + p['b_f2']
    x = x + ln(ff, p['ln'][4], p['ln'][5])
    return x


if __name__ == "__main__":
    key = jax.random.PRNGKey(0)
    k_par, k_tgt, k_mem = jax.random.split(key, 3)

    params = init_params(k_par)

    tgt = jax.random.normal(k_tgt, (B, T, D_MODEL), jnp.float32)
    mem = jax.random.normal(k_mem, (B, S, D_MODEL), jnp.float32)
    # causal target mask, all-ones memory mask (float 0/1, 0 == masked)
    tgt_mask = jnp.broadcast_to(
        jnp.tril(jnp.ones((T, T), jnp.float32)), (B, T, T)).astype(jnp.float32)
    mem_mask = jnp.ones((B, T, S), jnp.float32)

    out = decode_layer_pallas(tgt, mem, tgt_mask, mem_mask, params)
    out = jax.block_until_ready(out)

    ref = decode_layer_ref(tgt, mem, tgt_mask, mem_mask, params)
    np.testing.assert_allclose(np.asarray(out), np.asarray(ref),
                               rtol=1e-2, atol=1e-2)
    print("KERNEL_OK")
</pallas_src>

<mosaic_0001>
module attributes {stable_mosaic.version = 11 : i64} {
  func.func @decode_layer_kernel(%arg0: i32, %arg1: memref<2x8x32xf32, #tpu.memory_space<vmem>>, %arg2: memref<2x8x32xf32, #tpu.memory_space<vmem>>, %arg3: memref<2x8x8xf32, #tpu.memory_space<vmem>>, %arg4: memref<2x8x8xf32, #tpu.memory_space<vmem>>, %arg5: memref<32x96xf32, #tpu.memory_space<vmem>>, %arg6: memref<1x96xf32, #tpu.memory_space<vmem>>, %arg7: memref<32x32xf32, #tpu.memory_space<vmem>>, %arg8: memref<1x32xf32, #tpu.memory_space<vmem>>, %arg9: memref<32x64xf32, #tpu.memory_space<vmem>>, %arg10: memref<1x64xf32, #tpu.memory_space<vmem>>, %arg11: memref<32x32xf32, #tpu.memory_space<vmem>>, %arg12: memref<1x32xf32, #tpu.memory_space<vmem>>, %arg13: memref<32x32xf32, #tpu.memory_space<vmem>>, %arg14: memref<1x32xf32, #tpu.memory_space<vmem>>, %arg15: memref<6x32xf32, #tpu.memory_space<vmem>>, %arg16: memref<16x32xf32, #tpu.memory_space<vmem>>) attributes {dimension_semantics = [#tpu.dimension_semantics<arbitrary>], iteration_bounds = array<i64: 1>, scalar_prefetch = 0 : i64, scratch_operands = 0 : i64, tpu.core_type = #tpu.core_type<tc>, window_params = [{pipeline_mode = #tpu.pipeline_mode<synchronous>, transform_indices = @transform_0, window_bounds = array<i64: 2, 8, 32>}, {pipeline_mode = #tpu.pipeline_mode<synchronous>, transform_indices = @transform_1, window_bounds = array<i64: 2, 8, 32>}, {pipeline_mode = #tpu.pipeline_mode<synchronous>, transform_indices = @transform_2, window_bounds = array<i64: 2, 8, 8>}, {pipeline_mode = #tpu.pipeline_mode<synchronous>, transform_indices = @transform_3, window_bounds = array<i64: 2, 8, 8>}, {pipeline_mode = #tpu.pipeline_mode<synchronous>, transform_indices = @transform_4, window_bounds = array<i64: 32, 96>}, {pipeline_mode = #tpu.pipeline_mode<synchronous>, transform_indices = @transform_5, window_bounds = array<i64: 1, 96>}, {pipeline_mode = #tpu.pipeline_mode<synchronous>, transform_indices = @transform_6, window_bounds = array<i64: 32, 32>}, {pipeline_mode = #tpu.pipeline_mode<synchronous>, transform_indices = @transform_7, window_bounds = array<i64: 1, 32>}, {pipeline_mode = #tpu.pipeline_mode<synchronous>, transform_indices = @transform_8, window_bounds = array<i64: 32, 64>}, {pipeline_mode = #tpu.pipeline_mode<synchronous>, transform_indices = @transform_9, window_bounds = array<i64: 1, 64>}, {pipeline_mode = #tpu.pipeline_mode<synchronous>, transform_indices = @transform_10, window_bounds = array<i64: 32, 32>}, {pipeline_mode = #tpu.pipeline_mode<synchronous>, transform_indices = @transform_11, window_bounds = array<i64: 1, 32>}, {pipeline_mode = #tpu.pipeline_mode<synchronous>, transform_indices = @transform_12, window_bounds = array<i64: 32, 32>}, {pipeline_mode = #tpu.pipeline_mode<synchronous>, transform_indices = @transform_13, window_bounds = array<i64: 1, 32>}, {pipeline_mode = #tpu.pipeline_mode<synchronous>, transform_indices = @transform_14, window_bounds = array<i64: 6, 32>}, {pipeline_mode = #tpu.pipeline_mode<synchronous>, transform_indices = @transform_15, window_bounds = array<i64: 16, 32>}]} {
    %c0 = arith.constant 0 : index
    %c0_0 = arith.constant 0 : index
    %c0_1 = arith.constant 0 : index
    %0 = vector.load %arg1[%c0, %c0_0, %c0_1] : memref<2x8x32xf32, #tpu.memory_space<vmem>>, vector<2x8x32xf32>
    %1 = vector.shape_cast %0 : vector<2x8x32xf32> to vector<16x32xf32>
    %c0_2 = arith.constant 0 : index
    %c0_3 = arith.constant 0 : index
    %c0_4 = arith.constant 0 : index
    %2 = vector.load %arg2[%c0_2, %c0_3, %c0_4] : memref<2x8x32xf32, #tpu.memory_space<vmem>>, vector<2x8x32xf32>
    %3 = vector.shape_cast %2 : vector<2x8x32xf32> to vector<16x32xf32>
    %c0_5 = arith.constant 0 : index
    %c0_6 = arith.constant 0 : index
    %c0_7 = arith.constant 0 : index
    %4 = vector.load %arg3[%c0_5, %c0_6, %c0_7] : memref<2x8x8xf32, #tpu.memory_space<vmem>>, vector<2x8x8xf32>
    %c0_8 = arith.constant 0 : index
    %c0_9 = arith.constant 0 : index
    %c0_10 = arith.constant 0 : index
    %5 = vector.load %arg4[%c0_8, %c0_9, %c0_10] : memref<2x8x8xf32, #tpu.memory_space<vmem>>, vector<2x8x8xf32>
    %c0_11 = arith.constant 0 : index
    %c0_12 = arith.constant 0 : index
    %6 = vector.load %arg5[%c0_11, %c0_12] : memref<32x96xf32, #tpu.memory_space<vmem>>, vector<32x96xf32>
    %cst = arith.constant dense<0.000000e+00> : vector<16x96xf32>
    %7 = tpu.matmul %1, %6, %cst {dimension_numbers = #tpu.dot_dimension_numbers<[1], [0], [0], [1], [0, 0, 1, 1], [], []>} : vector<16x32xf32>, vector<32x96xf32>, vector<16x96xf32> -> vector<16x96xf32>
    %c0_13 = arith.constant 0 : index
    %c0_14 = arith.constant 0 : index
    %8 = vector.load %arg6[%c0_13, %c0_14] : memref<1x96xf32, #tpu.memory_space<vmem>>, vector<1x96xf32>
    %9 = vector.broadcast %8 : vector<1x96xf32> to vector<16x96xf32>
    %10 = arith.addf %7, %9 : vector<16x96xf32>
    %11 = vector.shape_cast %10 : vector<16x96xf32> to vector<2x8x96xf32>
    %12 = vector.extract_strided_slice %11 {offsets = [0, 0, 0], sizes = [2, 8, 32], strides = [1, 1, 1]} : vector<2x8x96xf32> to vector<2x8x32xf32>
    %13 = vector.extract_strided_slice %11 {offsets = [0, 0, 32], sizes = [2, 8, 32], strides = [1, 1, 1]} : vector<2x8x96xf32> to vector<2x8x32xf32>
    %14 = vector.extract_strided_slice %11 {offsets = [0, 0, 64], sizes = [2, 8, 32], strides = [1, 1, 1]} : vector<2x8x96xf32> to vector<2x8x32xf32>
    %15 = vector.extract_strided_slice %12 {offsets = [0, 0, 0], sizes = [2, 8, 8], strides = [1, 1, 1]} : vector<2x8x32xf32> to vector<2x8x8xf32>
    %16 = vector.extract_strided_slice %13 {offsets = [0, 0, 0], sizes = [2, 8, 8], strides = [1, 1, 1]} : vector<2x8x32xf32> to vector<2x8x8xf32>
    "tpu.trace_start"() <{level = 10 : i32, message = "btd,bsd->bts"}> : () -> ()
    %cst_15 = arith.constant dense<0.000000e+00> : vector<2x8x8xf32>
    %17 = tpu.matmul %15, %16, %cst_15 {dimension_numbers = #tpu.dot_dimension_numbers<[2], [2], [1], [1], [0, 0, 0, 1, 1, 1], [0], [0]>} : vector<2x8x8xf32>, vector<2x8x8xf32>, vector<2x8x8xf32> -> vector<2x8x8xf32>
    "tpu.trace_stop"() : () -> ()
    %cst_16 = arith.constant 0.353553385 : f32
    %18 = vector.broadcast %cst_16 : f32 to vector<2x8x8xf32>
    %19 = arith.mulf %17, %18 : vector<2x8x8xf32>
    %20 = arith.addf %19, %4 : vector<2x8x8xf32>
    %cst_17 = arith.constant dense<0xFF800000> : vector<2x8xf32>
    %21 = vector.multi_reduction <maximumf>, %20, %cst_17 [2] : vector<2x8x8xf32> to vector<2x8xf32>
    %22 = vector.shape_cast %21 : vector<2x8xf32> to vector<2x8x1xf32>
    %23 = vector.broadcast %22 : vector<2x8x1xf32> to vector<2x8x8xf32>
    %24 = arith.subf %20, %23 : vector<2x8x8xf32>
    %25 = math.exp %24 : vector<2x8x8xf32>
    %cst_18 = arith.constant dense<0.000000e+00> : vector<2x8xf32>
    %26 = vector.multi_reduction <add>, %25, %cst_18 [2] : vector<2x8x8xf32> to vector<2x8xf32>
    %27 = vector.shape_cast %26 : vector<2x8xf32> to vector<2x8x1xf32>
    %28 = tpu.reciprocal %27 {approx = true} : vector<2x8x1xf32> -> vector<2x8x1xf32>
    %29 = vector.broadcast %28 : vector<2x8x1xf32> to vector<2x8x8xf32>
    %30 = arith.mulf %25, %29 : vector<2x8x8xf32>
    %31 = vector.extract_strided_slice %14 {offsets = [0, 0, 0], sizes = [2, 8, 8], strides = [1, 1, 1]} : vector<2x8x32xf32> to vector<2x8x8xf32>
    "tpu.trace_start"() <{level = 10 : i32, message = "bts,bsd->btd"}> : () -> ()
    %cst_19 = arith.constant dense<0.000000e+00> : vector<2x8x8xf32>
    %32 = tpu.matmul %30, %31, %cst_19 {dimension_numbers = #tpu.dot_dimension_numbers<[2], [1], [1], [2], [0, 0, 0, 1, 1, 2], [0], [0]>} : vector<2x8x8xf32>, vector<2x8x8xf32>, vector<2x8x8xf32> -> vector<2x8x8xf32>
    "tpu.trace_stop"() : () -> ()
    %33 = vector.extract_strided_slice %12 {offsets = [0, 0, 8], sizes = [2, 8, 8], strides = [1, 1, 1]} : vector<2x8x32xf32> to vector<2x8x8xf32>
    %34 = vector.extract_strided_slice %13 {offsets = [0, 0, 8], sizes = [2, 8, 8], strides = [1, 1, 1]} : vector<2x8x32xf32> to vector<2x8x8xf32>
    "tpu.trace_start"() <{level = 10 : i32, message = "btd,bsd->bts"}> : () -> ()
    %cst_20 = arith.constant dense<0.000000e+00> : vector<2x8x8xf32>
    %35 = tpu.matmul %33, %34, %cst_20 {dimension_numbers = #tpu.dot_dimension_numbers<[2], [2], [1], [1], [0, 0, 0, 1, 1, 1], [0], [0]>} : vector<2x8x8xf32>, vector<2x8x8xf32>, vector<2x8x8xf32> -> vector<2x8x8xf32>
    "tpu.trace_stop"() : () -> ()
    %cst_21 = arith.constant 0.353553385 : f32
    %36 = vector.broadcast %cst_21 : f32 to vector<2x8x8xf32>
    %37 = arith.mulf %35, %36 : vector<2x8x8xf32>
    %38 = arith.addf %37, %4 : vector<2x8x8xf32>
    %cst_22 = arith.constant dense<0xFF800000> : vector<2x8xf32>
    %39 = vector.multi_reduction <maximumf>, %38, %cst_22 [2] : vector<2x8x8xf32> to vector<2x8xf32>
    %40 = vector.shape_cast %39 : vector<2x8xf32> to vector<2x8x1xf32>
    %41 = vector.broadcast %40 : vector<2x8x1xf32> to vector<2x8x8xf32>
    %42 = arith.subf %38, %41 : vector<2x8x8xf32>
    %43 = math.exp %42 : vector<2x8x8xf32>
    %cst_23 = arith.constant dense<0.000000e+00> : vector<2x8xf32>
    %44 = vector.multi_reduction <add>, %43, %cst_23 [2] : vector<2x8x8xf32> to vector<2x8xf32>
    %45 = vector.shape_cast %44 : vector<2x8xf32> to vector<2x8x1xf32>
    %46 = tpu.reciprocal %45 {approx = true} : vector<2x8x1xf32> -> vector<2x8x1xf32>
    %47 = vector.broadcast %46 : vector<2x8x1xf32> to vector<2x8x8xf32>
    %48 = arith.mulf %43, %47 : vector<2x8x8xf32>
    %49 = vector.extract_strided_slice %14 {offsets = [0, 0, 8], sizes = [2, 8, 8], strides = [1, 1, 1]} : vector<2x8x32xf32> to vector<2x8x8xf32>
    "tpu.trace_start"() <{level = 10 : i32, message = "bts,bsd->btd"}> : () -> ()
    %cst_24 = arith.constant dense<0.000000e+00> : vector<2x8x8xf32>
    %50 = tpu.matmul %48, %49, %cst_24 {dimension_numbers = #tpu.dot_dimension_numbers<[2], [1], [1], [2], [0, 0, 0, 1, 1, 2], [0], [0]>} : vector<2x8x8xf32>, vector<2x8x8xf32>, vector<2x8x8xf32> -> vector<2x8x8xf32>
    "tpu.trace_stop"() : () -> ()
    %51 = vector.extract_strided_slice %12 {offsets = [0, 0, 16], sizes = [2, 8, 8], strides = [1, 1, 1]} : vector<2x8x32xf32> to vector<2x8x8xf32>
    %52 = vector.extract_strided_slice %13 {offsets = [0, 0, 16], sizes = [2, 8, 8], strides = [1, 1, 1]} : vector<2x8x32xf32> to vector<2x8x8xf32>
    "tpu.trace_start"() <{level = 10 : i32, message = "btd,bsd->bts"}> : () -> ()
    %cst_25 = arith.constant dense<0.000000e+00> : vector<2x8x8xf32>
    %53 = tpu.matmul %51, %52, %cst_25 {dimension_numbers = #tpu.dot_dimension_numbers<[2], [2], [1], [1], [0, 0, 0, 1, 1, 1], [0], [0]>} : vector<2x8x8xf32>, vector<2x8x8xf32>, vector<2x8x8xf32> -> vector<2x8x8xf32>
    "tpu.trace_stop"() : () -> ()
    %cst_26 = arith.constant 0.353553385 : f32
    %54 = vector.broadcast %cst_26 : f32 to vector<2x8x8xf32>
    %55 = arith.mulf %53, %54 : vector<2x8x8xf32>
    %56 = arith.addf %55, %4 : vector<2x8x8xf32>
    %cst_27 = arith.constant dense<0xFF800000> : vector<2x8xf32>
    %57 = vector.multi_reduction <maximumf>, %56, %cst_27 [2] : vector<2x8x8xf32> to vector<2x8xf32>
    %58 = vector.shape_cast %57 : vector<2x8xf32> to vector<2x8x1xf32>
    %59 = vector.broadcast %58 : vector<2x8x1xf32> to vector<2x8x8xf32>
    %60 = arith.subf %56, %59 : vector<2x8x8xf32>
    %61 = math.exp %60 : vector<2x8x8xf32>
    %cst_28 = arith.constant dense<0.000000e+00> : vector<2x8xf32>
    %62 = vector.multi_reduction <add>, %61, %cst_28 [2] : vector<2x8x8xf32> to vector<2x8xf32>
    %63 = vector.shape_cast %62 : vector<2x8xf32> to vector<2x8x1xf32>
    %64 = tpu.reciprocal %63 {approx = true} : vector<2x8x1xf32> -> vector<2x8x1xf32>
    %65 = vector.broadcast %64 : vector<2x8x1xf32> to vector<2x8x8xf32>
    %66 = arith.mulf %61, %65 : vector<2x8x8xf32>
    %67 = vector.extract_strided_slice %14 {offsets = [0, 0, 16], sizes = [2, 8, 8], strides = [1, 1, 1]} : vector<2x8x32xf32> to vector<2x8x8xf32>
    "tpu.trace_start"() <{level = 10 : i32, message = "bts,bsd->btd"}> : () -> ()
    %cst_29 = arith.constant dense<0.000000e+00> : vector<2x8x8xf32>
    %68 = tpu.matmul %66, %67, %cst_29 {dimension_numbers = #tpu.dot_dimension_numbers<[2], [1], [1], [2], [0, 0, 0, 1, 1, 2], [0], [0]>} : vector<2x8x8xf32>, vector<2x8x8xf32>, vector<2x8x8xf32> -> vector<2x8x8xf32>
    "tpu.trace_stop"() : () -> ()
    %69 = vector.extract_strided_slice %12 {offsets = [0, 0, 24], sizes = [2, 8, 8], strides = [1, 1, 1]} : vector<2x8x32xf32> to vector<2x8x8xf32>
    %70 = vector.extract_strided_slice %13 {offsets = [0, 0, 24], sizes = [2, 8, 8], strides = [1, 1, 1]} : vector<2x8x32xf32> to vector<2x8x8xf32>
    "tpu.trace_start"() <{level = 10 : i32, message = "btd,bsd->bts"}> : () -> ()
    %cst_30 = arith.constant dense<0.000000e+00> : vector<2x8x8xf32>
    %71 = tpu.matmul %69, %70, %cst_30 {dimension_numbers = #tpu.dot_dimension_numbers<[2], [2], [1], [1], [0, 0, 0, 1, 1, 1], [0], [0]>} : vector<2x8x8xf32>, vector<2x8x8xf32>, vector<2x8x8xf32> -> vector<2x8x8xf32>
    "tpu.trace_stop"() : () -> ()
    %cst_31 = arith.constant 0.353553385 : f32
    %72 = vector.broadcast %cst_31 : f32 to vector<2x8x8xf32>
    %73 = arith.mulf %71, %72 : vector<2x8x8xf32>
    %74 = arith.addf %73, %4 : vector<2x8x8xf32>
    %cst_32 = arith.constant dense<0xFF800000> : vector<2x8xf32>
    %75 = vector.multi_reduction <maximumf>, %74, %cst_32 [2] : vector<2x8x8xf32> to vector<2x8xf32>
    %76 = vector.shape_cast %75 : vector<2x8xf32> to vector<2x8x1xf32>
    %77 = vector.broadcast %76 : vector<2x8x1xf32> to vector<2x8x8xf32>
    %78 = arith.subf %74, %77 : vector<2x8x8xf32>
    %79 = math.exp %78 : vector<2x8x8xf32>
    %cst_33 = arith.constant dense<0.000000e+00> : vector<2x8xf32>
    %80 = vector.multi_reduction <add>, %79, %cst_33 [2] : vector<2x8x8xf32> to vector<2x8xf32>
    %81 = vector.shape_cast %80 : vector<2x8xf32> to vector<2x8x1xf32>
    %82 = tpu.reciprocal %81 {approx = true} : vector<2x8x1xf32> -> vector<2x8x1xf32>
    %83 = vector.broadcast %82 : vector<2x8x1xf32> to vector<2x8x8xf32>
    %84 = arith.mulf %79, %83 : vector<2x8x8xf32>
    %85 = vector.extract_strided_slice %14 {offsets = [0, 0, 24], sizes = [2, 8, 8], strides = [1, 1, 1]} : vector<2x8x32xf32> to vector<2x8x8xf32>
    "tpu.trace_start"() <{level = 10 : i32, message = "bts,bsd->btd"}> : () -> ()
    %cst_34 = arith.constant dense<0.000000e+00> : vector<2x8x8xf32>
    %86 = tpu.matmul %84, %85, %cst_34 {dimension_numbers = #tpu.dot_dimension_numbers<[2], [1], [1], [2], [0, 0, 0, 1, 1, 2], [0], [0]>} : vector<2x8x8xf32>, vector<2x8x8xf32>, vector<2x8x8xf32> -> vector<2x8x8xf32>
    "tpu.trace_stop"() : () -> ()
    %87 = tpu.concatenate %32, %50, %68, %86 in 2 : vector<2x8x8xf32>, vector<2x8x8xf32>, vector<2x8x8xf32>, vector<2x8x8xf32> -> vector<2x8x32xf32>
    %88 = vector.shape_cast %87 : vector<2x8x32xf32> to vector<16x32xf32>
    %cst_35 = arith.constant dense<0.000000e+00> : vector<16xf32>
    %89 = vector.multi_reduction <add>, %88, %cst_35 [1] : vector<16x32xf32> to vector<16xf32>
    %90 = vector.shape_cast %89 : vector<16xf32> to vector<16x1xf32>
    %cst_36 = arith.constant 3.200000e+01 : f32
    %91 = vector.broadcast %cst_36 : f32 to vector<16x1xf32>
    %92 = arith.divf %90, %91 : vector<16x1xf32>
    %93 = vector.broadcast %92 : vector<16x1xf32> to vector<16x32xf32>
    %94 = arith.subf %88, %93 : vector<16x32xf32>
    %95 = arith.mulf %94, %94 : vector<16x32xf32>
    %cst_37 = arith.constant dense<0.000000e+00> : vector<16xf32>
    %96 = vector.multi_reduction <add>, %95, %cst_37 [1] : vector<16x32xf32> to vector<16xf32>
    %97 = vector.shape_cast %96 : vector<16xf32> to vector<16x1xf32>
    %cst_38 = arith.constant 3.200000e+01 : f32
    %98 = vector.broadcast %cst_38 : f32 to vector<16x1xf32>
    %99 = arith.divf %97, %98 : vector<16x1xf32>
    %100 = vector.broadcast %92 : vector<16x1xf32> to vector<16x32xf32>
    %101 = arith.subf %88, %100 : vector<16x32xf32>
    %cst_39 = arith.constant 9.99999974E-6 : f32
    %102 = vector.broadcast %cst_39 : f32 to vector<16x1xf32>
    %103 = arith.addf %99, %102 : vector<16x1xf32>
    %104 = math.rsqrt %103 : vector<16x1xf32>
    %105 = vector.broadcast %104 : vector<16x1xf32> to vector<16x32xf32>
    %106 = arith.mulf %101, %105 : vector<16x32xf32>
    %c0_40 = arith.constant 0 : index
    %c0_41 = arith.constant 0 : index
    %107 = vector.load %arg15[%c0_40, %c0_41] : memref<6x32xf32, #tpu.memory_space<vmem>>, vector<1x32xf32>
    %108 = vector.broadcast %107 : vector<1x32xf32> to vector<16x32xf32>
    %109 = arith.mulf %106, %108 : vector<16x32xf32>
    %c1 = arith.constant 1 : index
    %c0_42 = arith.constant 0 : index
    %110 = vector.load %arg15[%c1, %c0_42] : memref<6x32xf32, #tpu.memory_space<vmem>>, vector<1x32xf32>
    %111 = vector.broadcast %110 : vector<1x32xf32> to vector<16x32xf32>
    %112 = arith.addf %109, %111 : vector<16x32xf32>
    %113 = arith.addf %1, %112 : vector<16x32xf32>
    %c0_43 = arith.constant 0 : index
    %c0_44 = arith.constant 0 : index
    %114 = vector.load %arg7[%c0_43, %c0_44] : memref<32x32xf32, #tpu.memory_space<vmem>>, vector<32x32xf32>
    %cst_45 = arith.constant dense<0.000000e+00> : vector<16x32xf32>
    %115 = tpu.matmul %113, %114, %cst_45 {dimension_numbers = #tpu.dot_dimension_numbers<[1], [0], [0], [1], [0, 0, 1, 1], [], []>} : vector<16x32xf32>, vector<32x32xf32>, vector<16x32xf32> -> vector<16x32xf32>
    %c0_46 = arith.constant 0 : index
    %c0_47 = arith.constant 0 : index
    %116 = vector.load %arg8[%c0_46, %c0_47] : memref<1x32xf32, #tpu.memory_space<vmem>>, vector<1x32xf32>
    %117 = vector.broadcast %116 : vector<1x32xf32> to vector<16x32xf32>
    %118 = arith.addf %115, %117 : vector<16x32xf32>
    %119 = vector.shape_cast %118 : vector<16x32xf32> to vector<2x8x32xf32>
    %c0_48 = arith.constant 0 : index
    %c0_49 = arith.constant 0 : index
    %120 = vector.load %arg9[%c0_48, %c0_49] : memref<32x64xf32, #tpu.memory_space<vmem>>, vector<32x64xf32>
    %cst_50 = arith.constant dense<0.000000e+00> : vector<16x64xf32>
    %121 = tpu.matmul %3, %120, %cst_50 {dimension_numbers = #tpu.dot_dimension_numbers<[1], [0], [0], [1], [0, 0, 1, 1], [], []>} : vector<16x32xf32>, vector<32x64xf32>, vector<16x64xf32> -> vector<16x64xf32>
    %c0_51 = arith.constant 0 : index
    %c0_52 = arith.constant 0 : index
    %122 = vector.load %arg10[%c0_51, %c0_52] : memref<1x64xf32, #tpu.memory_space<vmem>>, vector<1x64xf32>
    %123 = vector.broadcast %122 : vector<1x64xf32> to vector<16x64xf32>
    %124 = arith.addf %121, %123 : vector<16x64xf32>
    %125 = vector.shape_cast %124 : vector<16x64xf32> to vector<2x8x64xf32>
    %126 = vector.extract_strided_slice %125 {offsets = [0, 0, 0], sizes = [2, 8, 32], strides = [1, 1, 1]} : vector<2x8x64xf32> to vector<2x8x32xf32>
    %127 = vector.extract_strided_slice %125 {offsets = [0, 0, 32], sizes = [2, 8, 32], strides = [1, 1, 1]} : vector<2x8x64xf32> to vector<2x8x32xf32>
    %128 = vector.extract_strided_slice %119 {offsets = [0, 0, 0], sizes = [2, 8, 8], strides = [1, 1, 1]} : vector<2x8x32xf32> to vector<2x8x8xf32>
    %129 = vector.extract_strided_slice %126 {offsets = [0, 0, 0], sizes = [2, 8, 8], strides = [1, 1, 1]} : vector<2x8x32xf32> to vector<2x8x8xf32>
    "tpu.trace_start"() <{level = 10 : i32, message = "btd,bsd->bts"}> : () -> ()
    %cst_53 = arith.constant dense<0.000000e+00> : vector<2x8x8xf32>
    %130 = tpu.matmul %128, %129, %cst_53 {dimension_numbers = #tpu.dot_dimension_numbers<[2], [2], [1], [1], [0, 0, 0, 1, 1, 1], [0], [0]>} : vector<2x8x8xf32>, vector<2x8x8xf32>, vector<2x8x8xf32> -> vector<2x8x8xf32>
    "tpu.trace_stop"() : () -> ()
    %cst_54 = arith.constant 0.353553385 : f32
    %131 = vector.broadcast %cst_54 : f32 to vector<2x8x8xf32>
    %132 = arith.mulf %130, %131 : vector<2x8x8xf32>
    %133 = arith.addf %132, %5 : vector<2x8x8xf32>
    %cst_55 = arith.constant dense<0xFF800000> : vector<2x8xf32>
    %134 = vector.multi_reduction <maximumf>, %133, %cst_55 [2] : vector<2x8x8xf32> to vector<2x8xf32>
    %135 = vector.shape_cast %134 : vector<2x8xf32> to vector<2x8x1xf32>
    %136 = vector.broadcast %135 : vector<2x8x1xf32> to vector<2x8x8xf32>
    %137 = arith.subf %133, %136 : vector<2x8x8xf32>
    %138 = math.exp %137 : vector<2x8x8xf32>
    %cst_56 = arith.constant dense<0.000000e+00> : vector<2x8xf32>
    %139 = vector.multi_reduction <add>, %138, %cst_56 [2] : vector<2x8x8xf32> to vector<2x8xf32>
    %140 = vector.shape_cast %139 : vector<2x8xf32> to vector<2x8x1xf32>
    %141 = tpu.reciprocal %140 {approx = true} : vector<2x8x1xf32> -> vector<2x8x1xf32>
    %142 = vector.broadcast %141 : vector<2x8x1xf32> to vector<2x8x8xf32>
    %143 = arith.mulf %138, %142 : vector<2x8x8xf32>
    %144 = vector.extract_strided_slice %127 {offsets = [0, 0, 0], sizes = [2, 8, 8], strides = [1, 1, 1]} : vector<2x8x32xf32> to vector<2x8x8xf32>
    "tpu.trace_start"() <{level = 10 : i32, message = "bts,bsd->btd"}> : () -> ()
    %cst_57 = arith.constant dense<0.000000e+00> : vector<2x8x8xf32>
    %145 = tpu.matmul %143, %144, %cst_57 {dimension_numbers = #tpu.dot_dimension_numbers<[2], [1], [1], [2], [0, 0, 0, 1, 1, 2], [0], [0]>} : vector<2x8x8xf32>, vector<2x8x8xf32>, vector<2x8x8xf32> -> vector<2x8x8xf32>
    "tpu.trace_stop"() : () -> ()
    %146 = vector.extract_strided_slice %119 {offsets = [0, 0, 8], sizes = [2, 8, 8], strides = [1, 1, 1]} : vector<2x8x32xf32> to vector<2x8x8xf32>
    %147 = vector.extract_strided_slice %126 {offsets = [0, 0, 8], sizes = [2, 8, 8], strides = [1, 1, 1]} : vector<2x8x32xf32> to vector<2x8x8xf32>
    "tpu.trace_start"() <{level = 10 : i32, message = "btd,bsd->bts"}> : () -> ()
    %cst_58 = arith.constant dense<0.000000e+00> : vector<2x8x8xf32>
    %148 = tpu.matmul %146, %147, %cst_58 {dimension_numbers = #tpu.dot_dimension_numbers<[2], [2], [1], [1], [0, 0, 0, 1, 1, 1], [0], [0]>} : vector<2x8x8xf32>, vector<2x8x8xf32>, vector<2x8x8xf32> -> vector<2x8x8xf32>
    "tpu.trace_stop"() : () -> ()
    %cst_59 = arith.constant 0.353553385 : f32
    %149 = vector.broadcast %cst_59 : f32 to vector<2x8x8xf32>
    %150 = arith.mulf %148, %149 : vector<2x8x8xf32>
    %151 = arith.addf %150, %5 : vector<2x8x8xf32>
    %cst_60 = arith.constant dense<0xFF800000> : vector<2x8xf32>
    %152 = vector.multi_reduction <maximumf>, %151, %cst_60 [2] : vector<2x8x8xf32> to vector<2x8xf32>
    %153 = vector.shape_cast %152 : vector<2x8xf32> to vector<2x8x1xf32>
    %154 = vector.broadcast %153 : vector<2x8x1xf32> to vector<2x8x8xf32>
    %155 = arith.subf %151, %154 : vector<2x8x8xf32>
    %156 = math.exp %155 : vector<2x8x8xf32>
    %cst_61 = arith.constant dense<0.000000e+00> : vector<2x8xf32>
    %157 = vector.multi_reduction <add>, %156, %cst_61 [2] : vector<2x8x8xf32> to vector<2x8xf32>
    %158 = vector.shape_cast %157 : vector<2x8xf32> to vector<2x8x1xf32>
    %159 = tpu.reciprocal %158 {approx = true} : vector<2x8x1xf32> -> vector<2x8x1xf32>
    %160 = vector.broadcast %159 : vector<2x8x1xf32> to vector<2x8x8xf32>
    %161 = arith.mulf %156, %160 : vector<2x8x8xf32>
    %162 = vector.extract_strided_slice %127 {offsets = [0, 0, 8], sizes = [2, 8, 8], strides = [1, 1, 1]} : vector<2x8x32xf32> to vector<2x8x8xf32>
    "tpu.trace_start"() <{level = 10 : i32, message = "bts,bsd->btd"}> : () -> ()
    %cst_62 = arith.constant dense<0.000000e+00> : vector<2x8x8xf32>
    %163 = tpu.matmul %161, %162, %cst_62 {dimension_numbers = #tpu.dot_dimension_numbers<[2], [1], [1], [2], [0, 0, 0, 1, 1, 2], [0], [0]>} : vector<2x8x8xf32>, vector<2x8x8xf32>, vector<2x8x8xf32> -> vector<2x8x8xf32>
    "tpu.trace_stop"() : () -> ()
    %164 = vector.extract_strided_slice %119 {offsets = [0, 0, 16], sizes = [2, 8, 8], strides = [1, 1, 1]} : vector<2x8x32xf32> to vector<2x8x8xf32>
    %165 = vector.extract_strided_slice %126 {offsets = [0, 0, 16], sizes = [2, 8, 8], strides = [1, 1, 1]} : vector<2x8x32xf32> to vector<2x8x8xf32>
    "tpu.trace_start"() <{level = 10 : i32, message = "btd,bsd->bts"}> : () -> ()
    %cst_63 = arith.constant dense<0.000000e+00> : vector<2x8x8xf32>
    %166 = tpu.matmul %164, %165, %cst_63 {dimension_numbers = #tpu.dot_dimension_numbers<[2], [2], [1], [1], [0, 0, 0, 1, 1, 1], [0], [0]>} : vector<2x8x8xf32>, vector<2x8x8xf32>, vector<2x8x8xf32> -> vector<2x8x8xf32>
    "tpu.trace_stop"() : () -> ()
    %cst_64 = arith.constant 0.353553385 : f32
    %167 = vector.broadcast %cst_64 : f32 to vector<2x8x8xf32>
    %168 = arith.mulf %166, %167 : vector<2x8x8xf32>
    %169 = arith.addf %168, %5 : vector<2x8x8xf32>
    %cst_65 = arith.constant dense<0xFF800000> : vector<2x8xf32>
    %170 = vector.multi_reduction <maximumf>, %169, %cst_65 [2] : vector<2x8x8xf32> to vector<2x8xf32>
    %171 = vector.shape_cast %170 : vector<2x8xf32> to vector<2x8x1xf32>
    %172 = vector.broadcast %171 : vector<2x8x1xf32> to vector<2x8x8xf32>
    %173 = arith.subf %169, %172 : vector<2x8x8xf32>
    %174 = math.exp %173 : vector<2x8x8xf32>
    %cst_66 = arith.constant dense<0.000000e+00> : vector<2x8xf32>
    %175 = vector.multi_reduction <add>, %174, %cst_66 [2] : vector<2x8x8xf32> to vector<2x8xf32>
    %176 = vector.shape_cast %175 : vector<2x8xf32> to vector<2x8x1xf32>
    %177 = tpu.reciprocal %176 {approx = true} : vector<2x8x1xf32> -> vector<2x8x1xf32>
    %178 = vector.broadcast %177 : vector<2x8x1xf32> to vector<2x8x8xf32>
    %179 = arith.mulf %174, %178 : vector<2x8x8xf32>
    %180 = vector.extract_strided_slice %127 {offsets = [0, 0, 16], sizes = [2, 8, 8], strides = [1, 1, 1]} : vector<2x8x32xf32> to vector<2x8x8xf32>
    "tpu.trace_start"() <{level = 10 : i32, message = "bts,bsd->btd"}> : () -> ()
    %cst_67 = arith.constant dense<0.000000e+00> : vector<2x8x8xf32>
    %181 = tpu.matmul %179, %180, %cst_67 {dimension_numbers = #tpu.dot_dimension_numbers<[2], [1], [1], [2], [0, 0, 0, 1, 1, 2], [0], [0]>} : vector<2x8x8xf32>, vector<2x8x8xf32>, vector<2x8x8xf32> -> vector<2x8x8xf32>
    "tpu.trace_stop"() : () -> ()
    %182 = vector.extract_strided_slice %119 {offsets = [0, 0, 24], sizes = [2, 8, 8], strides = [1, 1, 1]} : vector<2x8x32xf32> to vector<2x8x8xf32>
    %183 = vector.extract_strided_slice %126 {offsets = [0, 0, 24], sizes = [2, 8, 8], strides = [1, 1, 1]} : vector<2x8x32xf32> to vector<2x8x8xf32>
    "tpu.trace_start"() <{level = 10 : i32, message = "btd,bsd->bts"}> : () -> ()
    %cst_68 = arith.constant dense<0.000000e+00> : vector<2x8x8xf32>
    %184 = tpu.matmul %182, %183, %cst_68 {dimension_numbers = #tpu.dot_dimension_numbers<[2], [2], [1], [1], [0, 0, 0, 1, 1, 1], [0], [0]>} : vector<2x8x8xf32>, vector<2x8x8xf32>, vector<2x8x8xf32> -> vector<2x8x8xf32>
    "tpu.trace_stop"() : () -> ()
    %cst_69 = arith.constant 0.353553385 : f32
    %185 = vector.broadcast %cst_69 : f32 to vector<2x8x8xf32>
    %186 = arith.mulf %184, %185 : vector<2x8x8xf32>
    %187 = arith.addf %186, %5 : vector<2x8x8xf32>
    %cst_70 = arith.constant dense<0xFF800000> : vector<2x8xf32>
    %188 = vector.multi_reduction <maximumf>, %187, %cst_70 [2] : vector<2x8x8xf32> to vector<2x8xf32>
    %189 = vector.shape_cast %188 : vector<2x8xf32> to vector<2x8x1xf32>
    %190 = vector.broadcast %189 : vector<2x8x1xf32> to vector<2x8x8xf32>
    %191 = arith.subf %187, %190 : vector<2x8x8xf32>
    %192 = math.exp %191 : vector<2x8x8xf32>
    %cst_71 = arith.constant dense<0.000000e+00> : vector<2x8xf32>
    %193 = vector.multi_reduction <add>, %192, %cst_71 [2] : vector<2x8x8xf32> to vector<2x8xf32>
    %194 = vector.shape_cast %193 : vector<2x8xf32> to vector<2x8x1xf32>
    %195 = tpu.reciprocal %194 {approx = true} : vector<2x8x1xf32> -> vector<2x8x1xf32>
    %196 = vector.broadcast %195 : vector<2x8x1xf32> to vector<2x8x8xf32>
    %197 = arith.mulf %192, %196 : vector<2x8x8xf32>
    %198 = vector.extract_strided_slice %127 {offsets = [0, 0, 24], sizes = [2, 8, 8], strides = [1, 1, 1]} : vector<2x8x32xf32> to vector<2x8x8xf32>
    "tpu.trace_start"() <{level = 10 : i32, message = "bts,bsd->btd"}> : () -> ()
    %cst_72 = arith.constant dense<0.000000e+00> : vector<2x8x8xf32>
    %199 = tpu.matmul %197, %198, %cst_72 {dimension_numbers = #tpu.dot_dimension_numbers<[2], [1], [1], [2], [0, 0, 0, 1, 1, 2], [0], [0]>} : vector<2x8x8xf32>, vector<2x8x8xf32>, vector<2x8x8xf32> -> vector<2x8x8xf32>
    "tpu.trace_stop"() : () -> ()
    %200 = tpu.concatenate %145, %163, %181, %199 in 2 : vector<2x8x8xf32>, vector<2x8x8xf32>, vector<2x8x8xf32>, vector<2x8x8xf32> -> vector<2x8x32xf32>
    %201 = vector.shape_cast %200 : vector<2x8x32xf32> to vector<16x32xf32>
    %cst_73 = arith.constant dense<0.000000e+00> : vector<16xf32>
    %202 = vector.multi_reduction <add>, %201, %cst_73 [1] : vector<16x32xf32> to vector<16xf32>
    %203 = vector.shape_cast %202 : vector<16xf32> to vector<16x1xf32>
    %cst_74 = arith.constant 3.200000e+01 : f32
    %204 = vector.broadcast %cst_74 : f32 to vector<16x1xf32>
    %205 = arith.divf %203, %204 : vector<16x1xf32>
    %206 = vector.broadcast %205 : vector<16x1xf32> to vector<16x32xf32>
    %207 = arith.subf %201, %206 : vector<16x32xf32>
    %208 = arith.mulf %207, %207 : vector<16x32xf32>
    %cst_75 = arith.constant dense<0.000000e+00> : vector<16xf32>
    %209 = vector.multi_reduction <add>, %208, %cst_75 [1] : vector<16x32xf32> to vector<16xf32>
    %210 = vector.shape_cast %209 : vector<16xf32> to vector<16x1xf32>
    %cst_76 = arith.constant 3.200000e+01 : f32
    %211 = vector.broadcast %cst_76 : f32 to vector<16x1xf32>
    %212 = arith.divf %210, %211 : vector<16x1xf32>
    %213 = vector.broadcast %205 : vector<16x1xf32> to vector<16x32xf32>
    %214 = arith.subf %201, %213 : vector<16x32xf32>
    %cst_77 = arith.constant 9.99999974E-6 : f32
    %215 = vector.broadcast %cst_77 : f32 to vector<16x1xf32>
    %216 = arith.addf %212, %215 : vector<16x1xf32>
    %217 = math.rsqrt %216 : vector<16x1xf32>
    %218 = vector.broadcast %217 : vector<16x1xf32> to vector<16x32xf32>
    %219 = arith.mulf %214, %218 : vector<16x32xf32>
    %c2 = arith.constant 2 : index
    %c0_78 = arith.constant 0 : index
    %220 = vector.load %arg15[%c2, %c0_78] : memref<6x32xf32, #tpu.memory_space<vmem>>, vector<1x32xf32>
    %221 = vector.broadcast %220 : vector<1x32xf32> to vector<16x32xf32>
    %222 = arith.mulf %219, %221 : vector<16x32xf32>
    %c3 = arith.constant 3 : index
    %c0_79 = arith.constant 0 : index
    %223 = vector.load %arg15[%c3, %c0_79] : memref<6x32xf32, #tpu.memory_space<vmem>>, vector<1x32xf32>
    %224 = vector.broadcast %223 : vector<1x32xf32> to vector<16x32xf32>
    %225 = arith.addf %222, %224 : vector<16x32xf32>
    %226 = arith.addf %113, %225 : vector<16x32xf32>
    %c0_80 = arith.constant 0 : index
    %c0_81 = arith.constant 0 : index
    %227 = vector.load %arg11[%c0_80, %c0_81] : memref<32x32xf32, #tpu.memory_space<vmem>>, vector<32x32xf32>
    %cst_82 = arith.constant dense<0.000000e+00> : vector<16x32xf32>
    %228 = tpu.matmul %226, %227, %cst_82 {dimension_numbers = #tpu.dot_dimension_numbers<[1], [0], [0], [1], [0, 0, 1, 1], [], []>} : vector<16x32xf32>, vector<32x32xf32>, vector<16x32xf32> -> vector<16x32xf32>
    %c0_83 = arith.constant 0 : index
    %c0_84 = arith.constant 0 : index
    %229 = vector.load %arg12[%c0_83, %c0_84] : memref<1x32xf32, #tpu.memory_space<vmem>>, vector<1x32xf32>
    %230 = vector.broadcast %229 : vector<1x32xf32> to vector<16x32xf32>
    %231 = arith.addf %228, %230 : vector<16x32xf32>
    %cst_85 = arith.constant 0.000000e+00 : f32
    %232 = vector.broadcast %cst_85 : f32 to vector<16x32xf32>
    %233 = arith.maximumf %231, %232 : vector<16x32xf32>
    %c0_86 = arith.constant 0 : index
    %c0_87 = arith.constant 0 : index
    %234 = vector.load %arg13[%c0_86, %c0_87] : memref<32x32xf32, #tpu.memory_space<vmem>>, vector<32x32xf32>
    %cst_88 = arith.constant dense<0.000000e+00> : vector<16x32xf32>
    %235 = tpu.matmul %233, %234, %cst_88 {dimension_numbers = #tpu.dot_dimension_numbers<[1], [0], [0], [1], [0, 0, 1, 1], [], []>} : vector<16x32xf32>, vector<32x32xf32>, vector<16x32xf32> -> vector<16x32xf32>
    %c0_89 = arith.constant 0 : index
    %c0_90 = arith.constant 0 : index
    %236 = vector.load %arg14[%c0_89, %c0_90] : memref<1x32xf32, #tpu.memory_space<vmem>>, vector<1x32xf32>
    %237 = vector.broadcast %236 : vector<1x32xf32> to vector<16x32xf32>
    %238 = arith.addf %235, %237 : vector<16x32xf32>
    %cst_91 = arith.constant dense<0.000000e+00> : vector<16xf32>
    %239 = vector.multi_reduction <add>, %238, %cst_91 [1] : vector<16x32xf32> to vector<16xf32>
    %240 = vector.shape_cast %239 : vector<16xf32> to vector<16x1xf32>
    %cst_92 = arith.constant 3.200000e+01 : f32
    %241 = vector.broadcast %cst_92 : f32 to vector<16x1xf32>
    %242 = arith.divf %240, %241 : vector<16x1xf32>
    %243 = vector.broadcast %242 : vector<16x1xf32> to vector<16x32xf32>
    %244 = arith.subf %238, %243 : vector<16x32xf32>
    %245 = arith.mulf %244, %244 : vector<16x32xf32>
    %cst_93 = arith.constant dense<0.000000e+00> : vector<16xf32>
    %246 = vector.multi_reduction <add>, %245, %cst_93 [1] : vector<16x32xf32> to vector<16xf32>
    %247 = vector.shape_cast %246 : vector<16xf32> to vector<16x1xf32>
    %cst_94 = arith.constant 3.200000e+01 : f32
    %248 = vector.broadcast %cst_94 : f32 to vector<16x1xf32>
    %249 = arith.divf %247, %248 : vector<16x1xf32>
    %250 = vector.broadcast %242 : vector<16x1xf32> to vector<16x32xf32>
    %251 = arith.subf %238, %250 : vector<16x32xf32>
    %cst_95 = arith.constant 9.99999974E-6 : f32
    %252 = vector.broadcast %cst_95 : f32 to vector<16x1xf32>
    %253 = arith.addf %249, %252 : vector<16x1xf32>
    %254 = math.rsqrt %253 : vector<16x1xf32>
    %255 = vector.broadcast %254 : vector<16x1xf32> to vector<16x32xf32>
    %256 = arith.mulf %251, %255 : vector<16x32xf32>
    %c4 = arith.constant 4 : index
    %c0_96 = arith.constant 0 : index
    %257 = vector.load %arg15[%c4, %c0_96] : memref<6x32xf32, #tpu.memory_space<vmem>>, vector<1x32xf32>
    %258 = vector.broadcast %257 : vector<1x32xf32> to vector<16x32xf32>
    %259 = arith.mulf %256, %258 : vector<16x32xf32>
    %c5 = arith.constant 5 : index
    %c0_97 = arith.constant 0 : index
    %260 = vector.load %arg15[%c5, %c0_97] : memref<6x32xf32, #tpu.memory_space<vmem>>, vector<1x32xf32>
    %261 = vector.broadcast %260 : vector<1x32xf32> to vector<16x32xf32>
    %262 = arith.addf %259, %261 : vector<16x32xf32>
    %263 = arith.addf %226, %262 : vector<16x32xf32>
    %c0_98 = arith.constant 0 : index
    %c0_99 = arith.constant 0 : index
    %264 = vector.load %arg16[%c0_98, %c0_99] : memref<16x32xf32, #tpu.memory_space<vmem>>, vector<16x32xf32>
    tpu.vector_store %arg16[%c0_98, %c0_99], %263 {strides = array<i32>} : memref<16x32xf32, #tpu.memory_space<vmem>>, vector<16x32xf32>,
    return
  }
  func.func @transform_0(%arg0: i32) -> (i32, i32, i32) {
    %c0_i32 = arith.constant 0 : i32
    %c0_i32_0 = arith.constant 0 : i32
    %c0_i32_1 = arith.constant 0 : i32
    %c0_i32_2 = arith.constant 0 : i32
    return %c0_i32, %c0_i32_0, %c0_i32_1 : i32, i32, i32
  }
  func.func @transform_1(%arg0: i32) -> (i32, i32, i32) {
    %c0_i32 = arith.constant 0 : i32
    %c0_i32_0 = arith.constant 0 : i32
    %c0_i32_1 = arith.constant 0 : i32
    %c0_i32_2 = arith.constant 0 : i32
    return %c0_i32, %c0_i32_0, %c0_i32_1 : i32, i32, i32
  }
  func.func @transform_2(%arg0: i32) -> (i32, i32, i32) {
    %c0_i32 = arith.constant 0 : i32
    %c0_i32_0 = arith.constant 0 : i32
    %c0_i32_1 = arith.constant 0 : i32
    %c0_i32_2 = arith.constant 0 : i32
    return %c0_i32, %c0_i32_0, %c0_i32_1 : i32, i32, i32
  }
  func.func @transform_3(%arg0: i32) -> (i32, i32, i32) {
    %c0_i32 = arith.constant 0 : i32
    %c0_i32_0 = arith.constant 0 : i32
    %c0_i32_1 = arith.constant 0 : i32
    %c0_i32_2 = arith.constant 0 : i32
    return %c0_i32, %c0_i32_0, %c0_i32_1 : i32, i32, i32
  }
  func.func @transform_4(%arg0: i32) -> (i32, i32) {
    %c0_i32 = arith.constant 0 : i32
    %c0_i32_0 = arith.constant 0 : i32
    %c0_i32_1 = arith.constant 0 : i32
    return %c0_i32, %c0_i32_0 : i32, i32
  }
  func.func @transform_5(%arg0: i32) -> (i32, i32) {
    %c0_i32 = arith.constant 0 : i32
    %c0_i32_0 = arith.constant 0 : i32
    %c0_i32_1 = arith.constant 0 : i32
    return %c0_i32, %c0_i32_0 : i32, i32
  }
  func.func @transform_6(%arg0: i32) -> (i32, i32) {
    %c0_i32 = arith.constant 0 : i32
    %c0_i32_0 = arith.constant 0 : i32
    %c0_i32_1 = arith.constant 0 : i32
    return %c0_i32, %c0_i32_0 : i32, i32
  }
  func.func @transform_7(%arg0: i32) -> (i32, i32) {
    %c0_i32 = arith.constant 0 : i32
    %c0_i32_0 = arith.constant 0 : i32
    %c0_i32_1 = arith.constant 0 : i32
    return %c0_i32, %c0_i32_0 : i32, i32
  }
  func.func @transform_8(%arg0: i32) -> (i32, i32) {
    %c0_i32 = arith.constant 0 : i32
    %c0_i32_0 = arith.constant 0 : i32
    %c0_i32_1 = arith.constant 0 : i32
    return %c0_i32, %c0_i32_0 : i32, i32
  }
  func.func @transform_9(%arg0: i32) -> (i32, i32) {
    %c0_i32 = arith.constant 0 : i32
    %c0_i32_0 = arith.constant 0 : i32
    %c0_i32_1 = arith.constant 0 : i32
    return %c0_i32, %c0_i32_0 : i32, i32
  }
  func.func @transform_10(%arg0: i32) -> (i32, i32) {
    %c0_i32 = arith.constant 0 : i32
    %c0_i32_0 = arith.constant 0 : i32
    %c0_i32_1 = arith.constant 0 : i32
    return %c0_i32, %c0_i32_0 : i32, i32
  }
  func.func @transform_11(%arg0: i32) -> (i32, i32) {
    %c0_i32 = arith.constant 0 : i32
    %c0_i32_0 = arith.constant 0 : i32
    %c0_i32_1 = arith.constant 0 : i32
    return %c0_i32, %c0_i32_0 : i32, i32
  }
  func.func @transform_12(%arg0: i32) -> (i32, i32) {
    %c0_i32 = arith.constant 0 : i32
    %c0_i32_0 = arith.constant 0 : i32
    %c0_i32_1 = arith.constant 0 : i32
    return %c0_i32, %c0_i32_0 : i32, i32
  }
  func.func @transform_13(%arg0: i32) -> (i32, i32) {
    %c0_i32 = arith.constant 0 : i32
    %c0_i32_0 = arith.constant 0 : i32
    %c0_i32_1 = arith.constant 0 : i32
    return %c0_i32, %c0_i32_0 : i32, i32
  }
  func.func @transform_14(%arg0: i32) -> (i32, i32) {
    %c0_i32 = arith.constant 0 : i32
    %c0_i32_0 = arith.constant 0 : i32
    %c0_i32_1 = arith.constant 0 : i32
    return %c0_i32, %c0_i32_0 : i32, i32
  }
  func.func @transform_15(%arg0: i32) -> (i32, i32) {
    %c0_i32 = arith.constant 0 : i32
    %c0_i32_0 = arith.constant 0 : i32
    %c0_i32_1 = arith.constant 0 : i32
    return %c0_i32, %c0_i32_0 : i32, i32
  }
}

</mosaic_0001>

<bundles_post_ra>
// kernel: tpu_custom_call.1
= control target key start
LH: loop header
LB: loop body
LE: loop exit
PB: predicated region body
PF: predicated region fallthrough
CT: control target
= control target key end

     0   :  { %20 = vsyncpa [#allocation3], 0  ;;  %s5072_s0 = inlined_call_operand.hbm [shape: f32[2,8,32], index: 0, kind: input, shape index: {}]   ;;  %s5073_s1 = inlined_call_operand.hbm [shape: f32[2,8,32], index: 1, kind: input, shape index: {}]   ;;  %s5074_s2 = inlined_call_operand.hbm [shape: f32[2,8,8], index: 2, kind: input, shape index: {}]   ;;  %s5075_s3 = inlined_call_operand.hbm [shape: f32[2,8,8], index: 3, kind: input, shape index: {}]   ;;  %s5076_s4 = inlined_call_operand.hbm [shape: f32[32,96], index: 4, kind: input, shape index: {}]   ;;  %s5077_s5 = inlined_call_operand.vmem [shape: f32[1,96], index: 5, kind: input, shape index: {}]   ;;  %s5078_s6 = inlined_call_operand.hbm [shape: f32[32,32], index: 6, kind: input, shape index: {}]   ;;  %s5079_s7 = inlined_call_operand.hbm [shape: f32[1,32], index: 7, kind: input, shape index: {}]   ;;  %s5080_s8 = inlined_call_operand.hbm [shape: f32[32,64], index: 8, kind: input, shape index: {}]   ;;  %s5081_s9 = inlined_call_operand.hbm [shape: f32[1,64], index: 9, kind: input, shape index: {}]   ;;  %s5082_s10 = inlined_call_operand.vmem [shape: f32[32,32], index: 10, kind: input, shape index: {}]   ;;  %s5083_s11 = inlined_call_operand.hbm [shape: f32[1,32], index: 11, kind: input, shape index: {}]   ;;  %s5084_s12 = inlined_call_operand.hbm [shape: f32[32,32], index: 12, kind: input, shape index: {}]   ;;  %s5085_s13 = inlined_call_operand.vmem [shape: f32[1,32], index: 13, kind: input, shape index: {}]   ;;  %s5086_s14 = inlined_call_operand.vmem [shape: f32[6,32], index: 14, kind: input, shape index: {}]   ;;  %s5087_s15 = inlined_call_operand.hbm [shape: f32[16,32], index: 15, kind: output, shape index: {}]  }
   0x1   :  { %21 = vsyncpa [#allocation6], 0 }
   0x2   :  { %22 = vsyncpa [#allocation9], 0 }
   0x3   :  { %23 = vsyncpa [#allocation12], 0 }
   0x4   :  { %24 = vsyncpa [#allocation15], 0 }
   0x5   :  { %25 = vsyncpa [#allocation18], 0 }
   0x6   :  { %26 = vsyncpa [#allocation4], 0  ;;  %s4346_s18 = smov [#allocation5]   ;;  %s4347_s20 = smov [#allocation8]  }
   0x7   :  { %s44_s19 = sshll.u32 %s4346_s18, 4  ;;  %s68_s21 = sshll.u32 %s4347_s20, 4  ;;  %s45_s19 = int_to_ptr.vmem [resolvable:$true] %s44_s19  ;;  %s4455_s21 = int_to_ptr.vmem [resolvable:$true] %s68_s21 }
   0x8   :  { %s4068_s24 = scalar_lea.hbm %s5073_s1, 256 }
   0x9   :  { %p4069_p0 = scmp.ne.s32.totalorder %s5073_s1, %s4068_s24  ;;  %p4072_p1 = scmp.lt.u32.totalorder %s4068_s24, %s5073_s1 }
   0xb   :  { %p4074_p2 = pnand %p4072_p1, %p4069_p0 }
   0xd   :  { %4077 = shalt.err (!%p4074_p2)
}
   0xe   :  { %s4078_s29 = scalar_lea.vmem %s45_s19, 256  ;;  %p4083_p4 = scmp.lt.s32.totalorder %s45_s19, %s45_s19 }
   0xf   :  { %p4079_p3 = scmp.ne.s32.totalorder %s45_s19, %s4078_s29  ;;  %p4084_p5 = scmp.lt.s32.totalorder %s4078_s29, %s4078_s29 }
  0x11   :  { %p4085_p6 = por %p4084_p5, %p4083_p4 }
  0x13   :  { %p4086_p7 = pnand %p4085_p6, %p4079_p3 }
  0x15   :  { %4089 = shalt.err (!%p4086_p7)
}
  0x16   :  { %s4348_s30 = smov 128   ;;  %s4349_s16 = smov 8  }
  0x17   :  { %50 = dma.hbm_to_vmem [thread:$0]  %s5073_s1, 256, %s45_s19, [#allocation6], %s4348_s30, %s4348_s30, %s4349_s16  }
  0x18   :  { %s4090_s23 = scalar_lea.hbm %s5075_s3, 256 }
  0x19   :  { %p4091_p8 = scmp.ne.s32.totalorder %s5075_s3, %s4090_s23  ;;  %p4094_p9 = scmp.lt.u32.totalorder %s4090_s23, %s5075_s3 }
  0x1b   :  { %p4096_p10 = pnand %p4094_p9, %p4091_p8 }
  0x1d   :  { %4099 = shalt.err (!%p4096_p10)
}
  0x1e   :  { %s4100_s28 = scalar_lea.vmem %s4455_s21, 256  ;;  %p4105_p12 = scmp.lt.s32.totalorder %s4455_s21, %s4455_s21 }
  0x1f   :  { %p4101_p11 = scmp.ne.s32.totalorder %s4455_s21, %s4100_s28  ;;  %p4106_p13 = scmp.lt.s32.totalorder %s4100_s28, %s4100_s28 }
  0x21   :  { %p4107_p0 = por %p4106_p13, %p4105_p12 }
  0x23   :  { %p4108_p1 = pnand %p4107_p0, %p4101_p11 }
  0x25   :  { %4111 = shalt.err (!%p4108_p1)
}
  0x26   :  { %74 = dma.hbm_to_vmem [thread:$0]  %s5075_s3, 256, %s4455_s21, [#allocation9], %s4348_s30, %s4348_s30, %s4349_s16  }
  0x27   :  { %s4350_s29 = smov [#allocation11]   ;;  %s4351_s18 = smov [#allocation14]  }
  0x28   :  { %s94_s17 = sshll.u32 %s4350_s29, 4  ;;  %s116_s20 = sshll.u32 %s4351_s18, 4  ;;  %s95_s17 = int_to_ptr.vmem [resolvable:$true] %s94_s17  ;;  %s4492_s20 = int_to_ptr.vmem [resolvable:$true] %s116_s20 }
  0x29   :  { %s4112_s24 = scalar_lea.hbm %s5078_s6, 512 }
  0x2a   :  { %p4113_p2 = scmp.ne.s32.totalorder %s5078_s6, %s4112_s24  ;;  %p4116_p3 = scmp.lt.u32.totalorder %s4112_s24, %s5078_s6 }
  0x2c   :  { %p4118_p4 = pnand %p4116_p3, %p4113_p2 }
  0x2e   :  { %4121 = shalt.err (!%p4118_p4)
}
  0x2f   :  { %s4122_s3 = scalar_lea.vmem %s95_s17, 512  ;;  %p4127_p6 = scmp.lt.s32.totalorder %s95_s17, %s95_s17 }
  0x30   :  { %p4123_p5 = scmp.ne.s32.totalorder %s95_s17, %s4122_s3  ;;  %p4128_p7 = scmp.lt.s32.totalorder %s4122_s3, %s4122_s3 }
  0x32   :  { %p4129_p8 = por %p4128_p7, %p4127_p6 }
  0x34   :  { %p4130_p9 = pnand %p4129_p8, %p4123_p5 }
  0x36   :  { %4133 = shalt.err (!%p4130_p9)
}
  0x37   :  { %100 = dma.hbm_to_vmem [thread:$0]  %s5078_s6, 512, %s95_s17, [#allocation12], %s4348_s30, %s4348_s30, %s4349_s16  }
  0x38   :  { %s4134_s18 = scalar_lea.hbm %s5080_s8, 512 }
  0x39   :  { %p4135_p10 = scmp.ne.s32.totalorder %s5080_s8, %s4134_s18  ;;  %p4138_p11 = scmp.lt.u32.totalorder %s4134_s18, %s5080_s8 }
  0x3b   :  { %p4140_p12 = pnand %p4138_p11, %p4135_p10 }
  0x3d   :  { %4143 = shalt.err (!%p4140_p12)
}
  0x3e   :  { %s4144_s26 = scalar_lea.vmem %s4492_s20, 512  ;;  %p4149_p0 = scmp.lt.s32.totalorder %s4492_s20, %s4492_s20 }
  0x3f   :  { %p4145_p13 = scmp.ne.s32.totalorder %s4492_s20, %s4144_s26  ;;  %p4150_p1 = scmp.lt.s32.totalorder %s4144_s26, %s4144_s26 }
  0x41   :  { %p4151_p2 = por %p4150_p1, %p4149_p0 }
  0x43   :  { %p4152_p3 = pnand %p4151_p2, %p4145_p13 }
  0x45   :  { %4155 = shalt.err (!%p4152_p3)
}
  0x46   :  { %122 = dma.hbm_to_vmem [thread:$0]  %s5080_s8, 512, %s4492_s20, [#allocation15], %s4348_s30, %s4348_s30, %s4349_s16  }
  0x47   :  { %s4352_s27 = smov [#allocation17]   ;;  %s4353_s3 = smov [#allocation2]  }
  0x48   :  { %s141_s28 = sshll.u32 %s4352_s27, 4  ;;  %s32_s21 = sshll.u32 %s4353_s3, 4  ;;  %s142_s28 = int_to_ptr.vmem [resolvable:$true] %s141_s28  ;;  %s4529_s21 = int_to_ptr.vmem [resolvable:$true] %s32_s21 }
  0x49   :  { %s4156_s29 = scalar_lea.hbm %s5083_s11, 16 }
  0x4a   :  { %p4157_p4 = scmp.ne.s32.totalorder %s5083_s11, %s4156_s29  ;;  %p4160_p5 = scmp.lt.u32.totalorder %s4156_s29, %s5083_s11 }
  0x4c   :  { %p4162_p6 = pnand %p4160_p5, %p4157_p4 }
  0x4e   :  { %4165 = shalt.err (!%p4162_p6)
}
  0x4f   :  { %s4166_s8 = scalar_lea.vmem %s142_s28, 16  ;;  %s4170_s20 = scalar_lea.vmem %s142_s28, 32 }
  0x50   :  { %p4167_p7 = scmp.ne.s32.totalorder %s142_s28, %s4166_s8  ;;  %p4171_p8 = scmp.lt.s32.totalorder %s142_s28, %s142_s28 }
  0x51   :  { %p4172_p9 = scmp.lt.s32.totalorder %s4170_s20, %s4166_s8 }
  0x53   :  { %p4173_p10 = por %p4172_p9, %p4171_p8 }
  0x55   :  { %p4174_p11 = pnand %p4173_p10, %p4167_p7 }
  0x57   :  { %4177 = shalt.err (!%p4174_p11)
}
  0x58   :  { %144 = dma.hbm_to_vmem [thread:$0]  %s5083_s11, 16, %s142_s28, [#allocation18]  }
  0x59   :  { %s4178_s27 = scalar_lea.hbm %s5072_s0, 256 }
  0x5a   :  { %p4179_p12 = scmp.ne.s32.totalorder %s5072_s0, %s4178_s27  ;;  %p4182_p13 = scmp.lt.u32.totalorder %s4178_s27, %s5072_s0 }
  0x5c   :  { %p4184_p0 = pnand %p4182_p13, %p4179_p12 }
  0x5e   :  { %4187 = shalt.err (!%p4184_p0)
}
  0x5f   :  { %s4188_s18 = scalar_lea.vmem %s4529_s21, 256  ;;  %p4193_p2 = scmp.lt.s32.totalorder %s4529_s21, %s4529_s21 }
  0x60   :  { %p4189_p1 = scmp.ne.s32.totalorder %s4529_s21, %s4188_s18  ;;  %p4194_p3 = scmp.lt.s32.totalorder %s4188_s18, %s4188_s18 }
  0x62   :  { %p4195_p4 = por %p4194_p3, %p4193_p2 }
  0x64   :  { %p4196_p5 = pnand %p4195_p4, %p4189_p1 }
  0x66   :  { %4199 = shalt.err (!%p4196_p5)
}
  0x67   :  { %38 = dma.hbm_to_vmem [thread:$0]  %s5072_s0, 256, %s4529_s21, [#allocation3], %s4348_s30, %s4348_s30, %s4349_s16  }
  0x68   :  { %s4354_s22 = smov [#allocation7]   ;;  %s4355_s24 = smov [#allocation10]  }
  0x69   :  { %s56_s23 = sshll.u32 %s4354_s22, 4  ;;  %s80_s8 = sshll.u32 %s4355_s24, 4  ;;  %s57_s23 = int_to_ptr.vmem [resolvable:$true] %s56_s23  ;;  %s4563_s8 = int_to_ptr.vmem [resolvable:$true] %s80_s8 }
  0x6a   :  { %s4200_s26 = scalar_lea.hbm %s5074_s2, 256 }
  0x6b   :  { %p4201_p6 = scmp.ne.s32.totalorder %s5074_s2, %s4200_s26  ;;  %p4204_p7 = scmp.lt.u32.totalorder %s4200_s26, %s5074_s2 }
  0x6d   :  { %p4206_p8 = pnand %p4204_p7, %p4201_p6 }
  0x6f   :  { %4209 = shalt.err (!%p4206_p8)
}
  0x70   :  { %s4210_s0 = scalar_lea.vmem %s57_s23, 256  ;;  %p4215_p10 = scmp.lt.s32.totalorder %s57_s23, %s57_s23 }
  0x71   :  { %p4211_p9 = scmp.ne.s32.totalorder %s57_s23, %s4210_s0  ;;  %p4216_p11 = scmp.lt.s32.totalorder %s4210_s0, %s4210_s0 }
  0x73   :  { %p4217_p12 = por %p4216_p11, %p4215_p10 }
  0x75   :  { %p4218_p13 = pnand %p4217_p12, %p4211_p9 }
  0x77   :  { %4221 = shalt.err (!%p4218_p13)
}
  0x78   :  { %62 = dma.hbm_to_vmem [thread:$0]  %s5074_s2, 256, %s57_s23, [#allocation6], %s4348_s30, %s4348_s30, %s4349_s16  }
  0x79   :  { %s4222_s18 = scalar_lea.hbm %s5076_s4, 512 }
  0x7a   :  { %p4223_p0 = scmp.ne.s32.totalorder %s5076_s4, %s4222_s18  ;;  %p4226_p1 = scmp.lt.u32.totalorder %s4222_s18, %s5076_s4 }
  0x7c   :  { %p4228_p2 = pnand %p4226_p1, %p4223_p0 }
  0x7e   :  { %4231 = shalt.err (!%p4228_p2)
}
  0x7f   :  { %s4232_s20 = scalar_lea.vmem %s4563_s8, 512  ;;  %p4237_p4 = scmp.lt.s32.totalorder %s4563_s8, %s4563_s8 }
  0x80   :  { %p4233_p3 = scmp.ne.s32.totalorder %s4563_s8, %s4232_s20  ;;  %p4238_p5 = scmp.lt.s32.totalorder %s4232_s20, %s4232_s20 }
  0x82   :  { %p4239_p6 = por %p4238_p5, %p4237_p4 }
  0x84   :  { %p4240_p7 = pnand %p4239_p6, %p4233_p3 }
  0x86   :  { %4243 = shalt.err (!%p4240_p7)
}
  0x87   :  { %86 = dma.hbm_to_vmem [thread:$0]  %s5076_s4, 512, %s4563_s8, [#allocation9], %s4348_s30, %s4348_s30, %s4349_s16  }
  0x88   :  { %s4356_s25 = smov [#allocation13]   ;;  %s4357_s6 = smov [#allocation16]  }
  0x89   :  { %s107_s26 = sshll.u32 %s4356_s25, 4  ;;  %s129_s17 = sshll.u32 %s4357_s6, 4  ;;  %s108_s26 = int_to_ptr.vmem [resolvable:$true] %s107_s26  ;;  %s130_s17 = int_to_ptr.vmem [resolvable:$true] %s129_s17 }
  0x8a   :  { %s4244_s0 = scalar_lea.hbm %s5079_s7, 16 }
  0x8b   :  { %p4245_p8 = scmp.ne.s32.totalorder %s5079_s7, %s4244_s0  ;;  %p4248_p9 = scmp.lt.u32.totalorder %s4244_s0, %s5079_s7 }
  0x8d   :  { %p4250_p10 = pnand %p4248_p9, %p4245_p8 }
  0x8f   :  { %4253 = shalt.err (!%p4250_p10)
}
  0x90   :  { %s4254_s4 = scalar_lea.vmem %s108_s26, 16  ;;  %s4258_s8 = scalar_lea.vmem %s108_s26, 32 }
  0x91   :  { %p4255_p11 = scmp.ne.s32.totalorder %s108_s26, %s4254_s4  ;;  %p4259_p12 = scmp.lt.s32.totalorder %s108_s26, %s108_s26 }
  0x92   :  { %p4260_p13 = scmp.lt.s32.totalorder %s4258_s8, %s4254_s4 }
  0x94   :  { %p4261_p0 = por %p4260_p13, %p4259_p12 }
  0x96   :  { %p4262_p1 = pnand %p4261_p0, %p4255_p11 }
  0x98   :  { %4265 = shalt.err (!%p4262_p1)
}
  0x99   :  { %110 = dma.hbm_to_vmem [thread:$0]  %s5079_s7, 16, %s108_s26, [#allocation12]  }
  0x9a   :  { %s4266_s24 = scalar_lea.hbm %s5081_s9, 16 }
  0x9b   :  { %p4267_p2 = scmp.ne.s32.totalorder %s5081_s9, %s4266_s24  ;;  %p4270_p3 = scmp.lt.u32.totalorder %s4266_s24, %s5081_s9 }
  0x9d   :  { %p4272_p4 = pnand %p4270_p3, %p4267_p2 }
  0x9f   :  { %4275 = shalt.err (!%p4272_p4)
}
  0xa0   :  { %s4276_s6 = scalar_lea.vmem %s130_s17, 16  ;;  %s4280_s27 = scalar_lea.vmem %s130_s17, 32 }
  0xa1   :  { %p4277_p5 = scmp.ne.s32.totalorder %s130_s17, %s4276_s6  ;;  %p4281_p6 = scmp.lt.s32.totalorder %s130_s17, %s130_s17 }
  0xa2   :  { %p4282_p7 = scmp.lt.s32.totalorder %s4280_s27, %s4276_s6 }
  0xa4   :  { %p4283_p8 = por %p4282_p7, %p4281_p6 }
  0xa6   :  { %p4284_p9 = pnand %p4283_p8, %p4277_p5 }
  0xa8   :  { %4287 = shalt.err (!%p4284_p9)
}
  0xa9   :  { %132 = dma.hbm_to_vmem [thread:$0]  %s5081_s9, 16, %s130_s17, [#allocation15]  }
  0xaa   :  { %s4358_s3 = smov [#allocation19]   ;;  %s4288_s19 = scalar_lea.hbm %s5084_s12, 512 }
  0xab   :  { %s150_s0 = sshll.u32 %s4358_s3, 4  ;;  %p4289_p10 = scmp.ne.s32.totalorder %s5084_s12, %s4288_s19  ;;  %s151_s0 = int_to_ptr.vmem [resolvable:$true] %s150_s0 }
  0xac   :  { %p4292_p11 = scmp.lt.u32.totalorder %s4288_s19, %s5084_s12 }
  0xae   :  { %p4294_p12 = pnand %p4292_p11, %p4289_p10 }
  0xb0   :  { %4297 = shalt.err (!%p4294_p12)
}
  0xb1   :  { %s4298_s11 = scalar_lea.vmem %s151_s0, 512  ;;  %p4303_p0 = scmp.lt.s32.totalorder %s151_s0, %s151_s0 }
  0xb2   :  { %p4299_p13 = scmp.ne.s32.totalorder %s151_s0, %s4298_s11  ;;  %p4304_p1 = scmp.lt.s32.totalorder %s4298_s11, %s4298_s11 }
  0xb4   :  { %p4305_p2 = por %p4304_p1, %p4303_p0 }
  0xb6   :  { %p4306_p3 = pnand %p4305_p2, %p4299_p13 }
  0xb8   :  { %4309 = shalt.err (!%p4306_p3)
}
  0xb9   :  { %156 = dma.hbm_to_vmem [thread:$0]  %s5084_s12, 512, %s151_s0, [#allocation18], %s4348_s30, %s4348_s30, %s4349_s16  }
  0xba   :  { %4332 = dma.done.wait [#allocation3], 256  }
  0xbb   :  { %4333 = vsyncadd [#allocation3], 4294967040 }
  0xbc   :  { %4334 = dma.done.wait [#allocation6], 512  }
  0xbd   :  { %4335 = vsyncadd [#allocation6], 4294966784 }
  0xbe   :  { %4336 = dma.done.wait [#allocation9], 768  }
  0xbf   :  { %4337 = vsyncadd [#allocation9], 4294966528 }
  0xc0   :  { %4338 = dma.done.wait [#allocation12], 528  }
  0xc1   :  { %4339 = vsyncadd [#allocation12], 4294966768 }
  0xc2   :  { %4340 = dma.done.wait [#allocation15], 528  }
  0xc3   :  { %4341 = vsyncadd [#allocation15], 4294966768 }
  0xc4   :  { %4342 = dma.done.wait [#allocation18], 528  }
  0xc5   :  { %4343 = vsyncadd [#allocation18], 4294966768  ;;  %vm213_vm0 = vcmask 261120   ;;  %v202_v0 = vld [vmem:[#allocation10] sm:$0xff]  ;;  %v203_v1 = vld [vmem:[#allocation10 + $0x8] sm:$0xff]  ;;  %v4359_v8 = vmov 0.0  }
  0xc6   :  { %v204_v2 = vld [vmem:[#allocation10 + $0x10] sm:$0xff]  ;;  %v3923_v3 = vpack.c.bf16 %v203_v1, %v202_v0  ;;  %v205_v4 = vld [vmem:[#allocation10 + $0x18] sm:$0xff]  ;;  %v4639_v5 = vld [vmem:[#allocation2] sm:$0xff]  ;;  %3719 = vmatprep.subr.mxu1 %v4359_v8  ;;  %vm4360_vm1 = vmmov 0   ;;  %s4361_s22 = smov 96   ;;  %vm298_vm2 = vcmask 64512  }
  0xc7   :  { %v3927_v6 = vpack.c.bf16 %v205_v4, %v204_v2  ;;  %3716 = vmatprep.mubr.msk.f32.mxu0 %vm213_vm0, %v4639_v5  ;;  %v4643_v7 = vld [vmem:[#allocation2 + $0x8] sm:$0xff]  ;;  %3721 = vmatprep.mubr.msk.f32.mxu1 %vm4360_vm1, %v4359_v8  ;;  %v3545_v9 = vld [vmem:[%s5077_s5] ss:$0 sm:$0xff]  ;;  %s4362_s5 = smov 64   ;;  %s4363_s24 = smov 88   ;;  %vm1659_vm3 = vcmask 195584  }
  0xc8   :  { %3924 = vmatprep.subr.bf16.mxu0 %v3923_v3  ;;  %v4676_v17 = vld [vmem:[#allocation7] sm:$0xff]  ;;  %v4679_v22 = vld [vmem:[#allocation7 + $0x8] sm:$0xff]  ;;  %s4364_s20 = smov 120   ;;  %s4365_s2 = smov 56   ;;  %vm1656_vm4 = vcmask 130048  }
  0xc9   :  { %3926 = vmatpush3.bf16.msra.mxu0 %v3923_v3  ;;  %s4366_s23 = smov 80   ;;  %s4367_s25 = smov 112  }
  0xca   :  { %3928 = vmatprep.subr.bf16.mxu0 %v3927_v6  ;;  %s4368_s6 = smov 48   ;;  %s4369_s27 = smov 72  }
  0xcb   :  { %s4370_s7 = smov 104   ;;  %s4371_s26 = smov 40  }
  0xcc   :  { %s4372_s3 = smov 16   ;;  %s4373_s0 = smov 24  }
  0xcd   :  { %3930 = vmatpush3.bf16.msra.mxu0 %v3927_v6 }
  0xce   :  { %3729 = vmatprep.subr.mxu0 %v4359_v8 }
  0xd0   :  { %3717 = vmatmul.mubr.msk.f32.vlgmr.msra.gmra.mrb[0].mxu0 %vm213_vm0, %v4643_v7 }
  0xd1   :  { %3731 = vmatprep.mubr.msk.f32.mxu0 %vm4360_vm1, %v4359_v8 }
 0x1a3   :  { %v3718_v10 = vpop.f32.mrb[0].mxu0 }
 0x1a4   :  { %v286_v11 = vpop.f32.mrb[1].mxu0  ;;  %v4660_v13 = vadd.f32 %v3718_v10, %v3545_v9 }
 0x1a5   :  { %v4656_v12 = vadd.f32 %v3545_v9, %v286_v11 }
 0x1a7   :  { %296 = vrot.lane.b32.xlu0 %v4656_v12, %s4361_s22 }
 0x1ab   :  { %374 = vrot.lane.b32.xlu0 %v4660_v13, %s4361_s22 }
 0x219   :  { %v297_v14 = vpop.permute.xlu0 %296 }
 0x21a   :  { %3720 = vmatpush3.xpose.msk.msra.mxu1 %vm298_vm2, %v297_v14 }
 0x21b   :  { %3724 = vmatprep.subr.mxu1 %v4359_v8 }
 0x21d   :  { %3722 = vmatmul.mubr.msk.f32.vlgmr.msra.gmra.mrb[0].mxu1 %vm298_vm2, %v4656_v12  ;;  %v375_v15 = vpop.permute.xlu0 %374 }
 0x21e   :  { %3725 = vmatpush3.xpose.msk.msra.mxu1 %vm298_vm2, %v375_v15  ;;  %3726 = vmatprep.mubr.msk.f32.mxu1 %vm4360_vm1, %v4359_v8 }
 0x21f   :  { %3734 = vmatprep.subr.mxu1 %v4359_v8 }
 0x221   :  { %3727 = vmatmul.mubr.msk.f32.vlgmr.msra.gmra.mrb[2].mxu1 %vm298_vm2, %v4660_v13 }
 0x222   :  { %3736 = vmatprep.mubr.msk.f32.mxu1 %vm4360_vm1, %v4359_v8 }
 0x2f0   :  { %v369_v16 = vpop.f32.mrb[0].mxu1 }
 0x2f1   :  { %v450_v18 = vmul.f32 0.35355338, %v369_v16  ;;  %v3723_v19 = vpop.f32.mrb[1].mxu1 }
 0x2f3   :  { %v452_v20 = vadd.f32 %v450_v18, %v4676_v17 }
 0x2f4   :  { %v446_v21 = vpop.f32.mrb[2].mxu1 }
 0x2f5   :  { %v451_v23 = vmul.f32 0.35355338, %v446_v21  ;;  %v3728_v24 = vpop.f32.mrb[3].mxu1  ;;  %v454_v25 = vsel %vm298_vm2, %v452_v20, -inf }
 0x2f6   :  { %455 = vmax.xlane.f32.xlu1 %v454_v25 }
 0x2f7   :  { %v453_v26 = vadd.f32 %v451_v23, %v4679_v22 }
 0x2f9   :  { %v457_v27 = vsel %vm298_vm2, %v453_v26, -inf }
 0x2fa   :  { %458 = vmax.xlane.f32.xlu1 %v457_v27 }
 0x30b   :  { %476 = vrot.lane.b32.xlu1 %v4656_v12, %s4362_s5 }
 0x30f   :  { %552 = vrot.lane.b32.xlu1 %v4660_v13, %s4362_s5 }
 0x313   :  { %630 = vrot.lane.b32.xlu1 %v4656_v12, %s4363_s24 }
 0x317   :  { %708 = vrot.lane.b32.xlu1 %v4660_v13, %s4363_s24 }
 0x383   :  { %v456_v28 = vpop.xlane.xlu1 %455 }
 0x384   :  { %v460_v29 = vsub.f32 %v452_v20, %v456_v28 }
 0x386   :  { %v462_v30 = vmul.f32 1.442695, %v460_v29 }
 0x387   :  { %v459_v31 = vpop.xlane.xlu1 %458 }
 0x388   :  { %3992 = vpow2.f32 %v462_v30  ;;  %v461_v32 = vsub.f32 %v453_v26, %v459_v31 }
 0x38a   :  { %v464_v33 = vmul.f32 1.442695, %v461_v32 }
 0x38b   :  { %v477_v34 = vpop.permute.xlu1 %476 }
 0x38c   :  { %3994 = vpow2.f32 %v464_v33  ;;  %3730 = vmatpush3.msra.mxu0 %v477_v34 }
 0x38d   :  { %3739 = vmatprep.subr.mxu0 %v4359_v8 }
 0x38f   :  { %v553_v35 = vpop.permute.xlu1 %552 }
 0x390   :  { %3735 = vmatpush3.msra.mxu1 %v553_v35 }
 0x391   :  { %3744 = vmatprep.subr.mxu1 %v4359_v8 }
 0x392   :  { %v3993_v36 = vpop.eup %3992 }
 0x393   :  { %v466_v37 = vsel %vm298_vm2, %v3993_v36, 0.0  ;;  %v631_v40 = vpop.permute.xlu1 %630 }
 0x394   :  { %467 = vadd.xlane.f32.xlu0 %v466_v37 }
 0x396   :  { %v3995_v38 = vpop.eup %3994 }
 0x397   :  { %v469_v39 = vsel %vm298_vm2, %v3995_v38, 0.0  ;;  %v709_v41 = vpop.permute.xlu1 %708 }
 0x398   :  { %470 = vadd.xlane.f32.xlu1 %v469_v39 }
 0x3a9   :  { %706 = vrot.lane.b32.xlu1 %v4660_v13, %s4364_s20 }
 0x3aa   :  { %628 = vrot.lane.b32.xlu0 %v4656_v12, %s4364_s20 }
 0x421   :  { %v468_v42 = vpop.xlane.xlu0 %467 }
 0x422   :  { %3996 = vrcp.f32 %v468_v42 }
 0x425   :  { %v471_v43 = vpop.xlane.xlu1 %470  ;;  %v629_v48 = vpop.permute.xlu0 %628 }
 0x426   :  { %3998 = vrcp.f32 %v471_v43 }
 0x429   :  { %v707_v49 = vpop.permute.xlu1 %706 }
 0x42c   :  { %v3997_v44 = vpop.eup %3996 }
 0x42d   :  { %v474_v45 = vmul.f32 %v3997_v44, %v3993_v36 }
 0x42f   :  { %3732 = vmatmul.mubr.msk.f32.vlgmr.msra.gmra.mrb[2].mxu0 %vm298_vm2, %v474_v45 }
 0x430   :  { %v3999_v46 = vpop.eup %3998  ;;  %3740 = vmatpush3.xpose.msk.msra.mxu0 %vm298_vm2, %v631_v40  ;;  %3741 = vmatprep.mubr.msk.f32.mxu0 %vm4360_vm1, %v4359_v8 }
 0x431   :  { %v475_v47 = vmul.f32 %v3999_v46, %v3995_v38  ;;  %3749 = vmatprep.subr.mxu0 %v4359_v8 }
 0x433   :  { %3737 = vmatmul.mubr.msk.f32.vlgmr.msra.gmra.mrb[4].mxu1 %vm298_vm2, %v475_v47  ;;  %3742 = vmatmul.mubr.msk.f32.vlgmr.msra.gmra.mrb[4].mxu0 %vm298_vm2, %v629_v48 }
 0x434   :  { %3745 = vmatpush3.xpose.msk.msra.mxu1 %vm298_vm2, %v709_v41  ;;  %3746 = vmatprep.mubr.msk.f32.mxu1 %vm4360_vm1, %v4359_v8 }
 0x435   :  { %3754 = vmatprep.subr.mxu1 %v4359_v8  ;;  %3751 = vmatprep.mubr.msk.f32.mxu0 %vm4360_vm1, %v4359_v8 }
 0x437   :  { %3747 = vmatmul.mubr.msk.f32.vlgmr.msra.gmra.mrb[6].mxu1 %vm298_vm2, %v707_v49 }
 0x438   :  { %3756 = vmatprep.mubr.msk.f32.mxu1 %vm4360_vm1, %v4359_v8 }
 0x502   :  { %v4714_v50 = vpop.f32.mrb[2].mxu0 }
 0x503   :  { %v3733_v51 = vpop.f32.mrb[3].mxu0 }
 0x506   :  { %v4716_v52 = vpop.f32.mrb[4].mxu1  ;;  %v702_v53 = vpop.f32.mrb[4].mxu0 }
 0x507   :  { %v784_v54 = vmul.f32 0.35355338, %v702_v53  ;;  %v3738_v55 = vpop.f32.mrb[5].mxu1  ;;  %v3743_v56 = vpop.f32.mrb[5].mxu0 }
 0x509   :  { %v786_v57 = vadd.f32 %v784_v54, %v4676_v17 }
 0x50a   :  { %v780_v58 = vpop.f32.mrb[6].mxu1 }
 0x50b   :  { %v785_v59 = vmul.f32 0.35355338, %v780_v58  ;;  %v3748_v60 = vpop.f32.mrb[7].mxu1  ;;  %v788_v61 = vsel %vm298_vm2, %v786_v57, -inf }
 0x50c   :  { %789 = vmax.xlane.f32.xlu1 %v788_v61 }
 0x50d   :  { %v787_v62 = vadd.f32 %v785_v59, %v4679_v22 }
 0x50f   :  { %v791_v63 = vsel %vm298_vm2, %v787_v62, -inf }
 0x510   :  { %792 = vmax.xlane.f32.xlu0 %v791_v63 }
 0x51d   :  { %810 = vrot.lane.b32.xlu1 %v4656_v12, %s4365_s2 }
 0x521   :  { %964 = vrot.lane.b32.xlu1 %v4656_v12, %s4366_s23 }
 0x525   :  { %1042 = vrot.lane.b32.xlu1 %v4660_v13, %s4366_s23 }
 0x526   :  { %886 = vrot.lane.b32.xlu0 %v4660_v13, %s4365_s2 }
 0x52a   :  { %962 = vrot.lane.b32.xlu0 %v4656_v12, %s4367_s25 }
 0x599   :  { %v790_v0 = vpop.xlane.xlu1 %789 }
 0x59a   :  { %v794_v1 = vsub.f32 %v786_v57, %v790_v0 }
 0x59c   :  { %v796_v2 = vmul.f32 1.442695, %v794_v1 }
 0x59d   :  { %v811_v3 = vpop.permute.xlu1 %810  ;;  %v793_v4 = vpop.xlane.xlu0 %792 }
 0x59e   :  { %4000 = vpow2.f32 %v796_v2  ;;  %v795_v6 = vsub.f32 %v787_v62, %v793_v4  ;;  %3750 = vmatpush3.msra.mxu0 %v811_v3 }
 0x59f   :  { %3759 = vmatprep.subr.mxu0 %v4359_v8 }
 0x5a0   :  { %v798_v9 = vmul.f32 1.442695, %v795_v6 }
 0x5a1   :  { %v887_v10 = vpop.permute.xlu0 %886  ;;  %v965_v18 = vpop.permute.xlu1 %964 }
 0x5a2   :  { %4002 = vpow2.f32 %v798_v9  ;;  %3755 = vmatpush3.msra.mxu1 %v887_v10 }
 0x5a3   :  { %3764 = vmatprep.subr.mxu1 %v4359_v8 }
 0x5a5   :  { %v1043_v19 = vpop.permute.xlu1 %1042  ;;  %v963_v27 = vpop.permute.xlu0 %962 }
 0x5a8   :  { %v4001_v11 = vpop.eup %4000 }
 0x5a9   :  { %v800_v14 = vsel %vm298_vm2, %v4001_v11, 0.0 }
 0x5aa   :  { %801 = vadd.xlane.f32.xlu1 %v800_v14 }
 0x5ac   :  { %v4003_v15 = vpop.eup %4002 }
 0x5ad   :  { %v803_v16 = vsel %vm298_vm2, %v4003_v15, 0.0 }
 0x5ae   :  { %804 = vadd.xlane.f32.xlu1 %v803_v16 }
 0x5bf   :  { %1040 = vrot.lane.b32.xlu1 %v4660_v13, %s4367_s25 }
 0x637   :  { %v802_v20 = vpop.xlane.xlu1 %801 }
 0x638   :  { %4004 = vrcp.f32 %v802_v20 }
 0x63b   :  { %v805_v21 = vpop.xlane.xlu1 %804 }
 0x63c   :  { %4006 = vrcp.f32 %v805_v21 }
 0x63f   :  { %v1041_v28 = vpop.permute.xlu1 %1040 }
 0x642   :  { %v4005_v23 = vpop.eup %4004 }
 0x643   :  { %v808_v24 = vmul.f32 %v4005_v23, %v4001_v11 }
 0x645   :  { %3752 = vmatmul.mubr.msk.f32.vlgmr.msra.gmra.mrb[6].mxu0 %vm298_vm2, %v808_v24 }
 0x646   :  { %v4007_v25 = vpop.eup %4006  ;;  %3760 = vmatpush3.xpose.msk.msra.mxu0 %vm298_vm2, %v965_v18  ;;  %3761 = vmatprep.mubr.msk.f32.mxu0 %vm4360_vm1, %v4359_v8 }
 0x647   :  { %v809_v26 = vmul.f32 %v4007_v25, %v4003_v15  ;;  %3769 = vmatprep.subr.mxu0 %v4359_v8 }
 0x649   :  { %3757 = vmatmul.mubr.msk.f32.vlgmr.msra.gmra.mrb[8].mxu1 %vm298_vm2, %v809_v26  ;;  %3762 = vmatmul.mubr.msk.f32.vlgmr.msra.gmra.mrb[8].mxu0 %vm298_vm2, %v963_v27 }
 0x64a   :  { %3765 = vmatpush3.xpose.msk.msra.mxu1 %vm298_vm2, %v1043_v19  ;;  %3766 = vmatprep.mubr.msk.f32.mxu1 %vm4360_vm1, %v4359_v8 }
 0x64b   :  { %3774 = vmatprep.subr.mxu1 %v4359_v8  ;;  %3771 = vmatprep.mubr.msk.f32.mxu0 %vm4360_vm1, %v4359_v8 }
 0x64d   :  { %3767 = vmatmul.mubr.msk.f32.vlgmr.msra.gmra.mrb[10].mxu1 %vm298_vm2, %v1041_v28 }
 0x64e   :  { %3776 = vmatprep.mubr.msk.f32.mxu1 %vm4360_vm1, %v4359_v8 }
 0x718   :  { %v4752_v29 = vpop.f32.mrb[6].mxu0 }
 0x719   :  { %v3753_v30 = vpop.f32.mrb[7].mxu0 }
 0x71c   :  { %v4754_v31 = vpop.f32.mrb[8].mxu1  ;;  %v1036_v32 = vpop.f32.mrb[8].mxu0 }
 0x71d   :  { %v1118_v33 = vmul.f32 0.35355338, %v1036_v32  ;;  %v3758_v34 = vpop.f32.mrb[9].mxu1  ;;  %v3763_v35 = vpop.f32.mrb[9].mxu0 }
 0x71f   :  { %v1120_v36 = vadd.f32 %v1118_v33, %v4676_v17 }
 0x720   :  { %v1114_v37 = vpop.f32.mrb[10].mxu1 }
 0x721   :  { %v1119_v38 = vmul.f32 0.35355338, %v1114_v37  ;;  %v3768_v39 = vpop.f32.mrb[11].mxu1  ;;  %v1122_v40 = vsel %vm298_vm2, %v1120_v36, -inf }
 0x722   :  { %1123 = vmax.xlane.f32.xlu0 %v1122_v40 }
 0x723   :  { %v1121_v41 = vadd.f32 %v1119_v38, %v4679_v22 }
 0x725   :  { %v1125_v42 = vsel %vm298_vm2, %v1121_v41, -inf }
 0x726   :  { %1126 = vmax.xlane.f32.xlu1 %v1125_v42 }
 0x737   :  { %1144 = vrot.lane.b32.xlu1 %v4656_v12, %s4368_s6 }
 0x738   :  { %1220 = vrot.lane.b32.xlu0 %v4660_v13, %s4368_s6 }
 0x73b   :  { %1298 = vrot.lane.b32.xlu1 %v4656_v12, %s4369_s27 }
 0x73f   :  { %1376 = vrot.lane.b32.xlu1 %v4660_v13, %s4369_s27 }
 0x743   :  { %1374 = vrot.lane.b32.xlu1 %v4660_v13, %s4370_s7 }
 0x7af   :  { %v1124_v43 = vpop.xlane.xlu0 %1123 }
 0x7b0   :  { %v1128_v44 = vsub.f32 %v1120_v36, %v1124_v43 }
 0x7b2   :  { %v1130_v45 = vmul.f32 1.442695, %v1128_v44 }
 0x7b3   :  { %v1127_v46 = vpop.xlane.xlu1 %1126  ;;  %v1221_v47 = vpop.permute.xlu0 %1220 }
 0x7b4   :  { %4008 = vpow2.f32 %v1130_v45  ;;  %v1129_v48 = vsub.f32 %v1121_v41, %v1127_v46  ;;  %3775 = vmatpush3.msra.mxu1 %v1221_v47 }
 0x7b5   :  { %3784 = vmatprep.subr.mxu1 %v4359_v8 }
 0x7b6   :  { %v1132_v49 = vmul.f32 1.442695, %v1129_v48 }
 0x7b7   :  { %v1145_v51 = vpop.permute.xlu1 %1144 }
 0x7b8   :  { %4010 = vpow2.f32 %v1132_v49  ;;  %3770 = vmatpush3.msra.mxu0 %v1145_v51 }
 0x7b9   :  { %3779 = vmatprep.subr.mxu0 %v4359_v8 }
 0x7bb   :  { %v1299_v59 = vpop.permute.xlu1 %1298 }
 0x7be   :  { %v4009_v53 = vpop.eup %4008 }
 0x7bf   :  { %v1134_v54 = vsel %vm298_vm2, %v4009_v53, 0.0  ;;  %v1377_v63 = vpop.permute.xlu1 %1376 }
 0x7c0   :  { %1135 = vadd.xlane.f32.xlu0 %v1134_v54 }
 0x7c2   :  { %v4011_v55 = vpop.eup %4010 }
 0x7c3   :  { %v1137_v56 = vsel %vm298_vm2, %v4011_v55, 0.0  ;;  %v1375_v2 = vpop.permute.xlu1 %1374 }
 0x7c4   :  { %1138 = vadd.xlane.f32.xlu0 %v1137_v56 }
 0x7da   :  { %1296 = vrot.lane.b32.xlu0 %v4656_v12, %s4370_s7 }
 0x84d   :  { %v1136_v57 = vpop.xlane.xlu0 %1135 }
 0x84e   :  { %4012 = vrcp.f32 %v1136_v57 }
 0x851   :  { %v1139_v58 = vpop.xlane.xlu0 %1138 }
 0x852   :  { %4014 = vrcp.f32 %v1139_v58 }
 0x855   :  { %v1297_v1 = vpop.permute.xlu0 %1296 }
 0x858   :  { %v4013_v60 = vpop.eup %4012 }
 0x859   :  { %v1142_v61 = vmul.f32 %v4013_v60, %v4009_v53 }
 0x85b   :  { %3772 = vmatmul.mubr.msk.f32.vlgmr.msra.gmra.mrb[10].mxu0 %vm298_vm2, %v1142_v61 }
 0x85c   :  { %v4015_v62 = vpop.eup %4014  ;;  %3780 = vmatpush3.xpose.msk.msra.mxu0 %vm298_vm2, %v1299_v59  ;;  %3781 = vmatprep.mubr.msk.f32.mxu0 %vm4360_vm1, %v4359_v8 }
 0x85d   :  { %v1143_v0 = vmul.f32 %v4015_v62, %v4011_v55  ;;  %3789 = vmatprep.subr.mxu0 %v4359_v8 }
 0x85f   :  { %3777 = vmatmul.mubr.msk.f32.vlgmr.msra.gmra.mrb[12].mxu1 %vm298_vm2, %v1143_v0  ;;  %3782 = vmatmul.mubr.msk.f32.vlgmr.msra.gmra.mrb[12].mxu0 %vm298_vm2, %v1297_v1 }
 0x860   :  { %3785 = vmatpush3.xpose.msk.msra.mxu1 %vm298_vm2, %v1377_v63  ;;  %3786 = vmatprep.mubr.msk.f32.mxu1 %vm4360_vm1, %v4359_v8 }
 0x861   :  { %3794 = vmatprep.subr.mxu1 %v4359_v8  ;;  %3791 = vmatprep.mubr.msk.f32.mxu0 %vm4360_vm1, %v4359_v8 }
 0x863   :  { %3787 = vmatmul.mubr.msk.f32.vlgmr.msra.gmra.mrb[14].mxu1 %vm298_vm2, %v1375_v2  ;;  %v1797_v2 = vld [vmem:[#allocation14] sm:$0xff] }
 0x864   :  { %3796 = vmatprep.mubr.msk.f32.mxu1 %vm4360_vm1, %v4359_v8 }
 0x92e   :  { %v1216_v3 = vpop.f32.mrb[10].mxu0 }
 0x92f   :  { %v3773_v4 = vpop.f32.mrb[11].mxu0 }
 0x932   :  { %v1292_v6 = vpop.f32.mrb[12].mxu1  ;;  %v1370_v9 = vpop.f32.mrb[12].mxu0 }
 0x933   :  { %v1452_v10 = vmul.f32 0.35355338, %v1370_v9  ;;  %v3778_v11 = vpop.f32.mrb[13].mxu1  ;;  %v3783_v14 = vpop.f32.mrb[13].mxu0  ;;  %v1706_v9 = vld [vmem:[#allocation11 + $0x8] sm:$0xff] }
 0x934   :  { %v1800_v14 = vld [vmem:[#allocation14 + $0x18] sm:$0xff] }
 0x935   :  { %v1454_v15 = vadd.f32 %v1452_v10, %v4676_v17  ;;  %v1799_v10 = vld [vmem:[#allocation14 + $0x10] sm:$0xff] }
 0x936   :  { %v1448_v16 = vpop.f32.mrb[14].mxu1 }
 0x937   :  { %v1453_v18 = vmul.f32 0.35355338, %v1448_v16  ;;  %v3788_v19 = vpop.f32.mrb[15].mxu1  ;;  %v1456_v20 = vsel %vm298_vm2, %v1454_v15, -inf  ;;  %v196_v16 = vld [vmem:[#allocation5] sm:$0xff] }
 0x938   :  { %1457 = vmax.xlane.f32.xlu0 %v1456_v20  ;;  %v1708_v19 = vld [vmem:[#allocation11 + $0x18] sm:$0xff] }
 0x939   :  { %v1455_v21 = vadd.f32 %v1453_v18, %v4679_v22  ;;  %v1707_v18 = vld [vmem:[#allocation11 + $0x10] sm:$0xff] }
 0x93a   :  { %v3935_v20 = vpack.c.bf16 %v1708_v19, %v1707_v18 }
 0x93b   :  { %v1459_v23 = vsel %vm298_vm2, %v1455_v21, -inf }
 0x93c   :  { %1460 = vmax.xlane.f32.xlu1 %v1459_v23 }
 0x94d   :  { %1478 = vrot.lane.b32.xlu1 %v4656_v12, %s4371_s26 }
 0x951   :  { %1632 = vrot.lane.b32.xlu1 %v4752_v29, %s4349_s16 }
 0x955   :  { %1634 = vrot.lane.b32.xlu1 %v4754_v31, %s4349_s16 }
 0x959   :  { %1642 = vrot.lane.b32.xlu1 %v1292_v6, %s4372_s3  ;;  %v1705_v6 = vld [vmem:[#allocation11] sm:$0xff] }
 0x95a   :  { %v3931_v11 = vpack.c.bf16 %v1706_v9, %v1705_v6 }
 0x9c5   :  { %v1458_v17 = vpop.xlane.xlu0 %1457 }
 0x9c6   :  { %v1462_v24 = vsub.f32 %v1454_v15, %v1458_v17  ;;  %v3943_v15 = vpack.c.bf16 %v1800_v14, %v1799_v10 }
 0x9c8   :  { %v1464_v25 = vmul.f32 1.442695, %v1462_v24 }
 0x9c9   :  { %v1461_v26 = vpop.xlane.xlu1 %1460 }
 0x9ca   :  { %4016 = vpow2.f32 %v1464_v25  ;;  %v1463_v22 = vsub.f32 %v1455_v21, %v1461_v26  ;;  %v197_v21 = vld [vmem:[#allocation5 + $0x8] sm:$0xff] }
 0x9cc   :  { %v1466_v27 = vmul.f32 1.442695, %v1463_v22 }
 0x9cd   :  { %v1479_v28 = vpop.permute.xlu1 %1478 }
 0x9ce   :  { %4018 = vpow2.f32 %v1466_v27  ;;  %3790 = vmatpush3.msra.mxu0 %v1479_v28  ;;  %v3572_v28 = vld [vmem:[%s5086_s14] ss:$0 sm:$0xff] }
 0x9cf   :  { %3932 = vmatprep.subr.bf16.mxu0 %v3931_v11 }
 0x9d1   :  { %v1633_v42 = vpop.permute.xlu1 %1632 }
 0x9d2   :  { %v1654_v45 = vsel %vm298_vm2, %v4714_v50, %v1633_v42 }
 0x9d4   :  { %v4017_v12 = vpop.eup %4016 }
 0x9d5   :  { %v1468_v30 = vsel %vm298_vm2, %v4017_v12, 0.0  ;;  %v1635_v43 = vpop.permute.xlu1 %1634 }
 0x9d6   :  { %1469 = vadd.xlane.f32.xlu0 %v1468_v30  ;;  %v1655_v53 = vsel %vm298_vm2, %v4716_v52, %v1635_v43  ;;  %v3573_v30 = vld [vmem:[%s5086_s14 + $0x1] ss:$0 sm:$0xff] }
 0x9d8   :  { %v4019_v29 = vpop.eup %4018 }
 0x9d9   :  { %v1471_v31 = vsel %vm298_vm2, %v4019_v29, 0.0  ;;  %v1643_v46 = vpop.permute.xlu1 %1642 }
 0x9da   :  { %1472 = vadd.xlane.f32.xlu0 %v1471_v31  ;;  %v1658_v54 = vsel %vm1656_vm4, %v1655_v53, %v1643_v46  ;;  %v4866_v46 = vld [vmem:[#allocation8 + $0x8] sm:$0xff] }
 0x9f0   :  { %1554 = vrot.lane.b32.xlu0 %v4660_v13, %s4371_s26 }
 0x9f4   :  { %1640 = vrot.lane.b32.xlu0 %v1216_v3, %s4372_s3  ;;  %v1798_v3 = vld [vmem:[#allocation14 + $0x8] sm:$0xff] }
 0x9f5   :  { %v3939_v4 = vpack.c.bf16 %v1798_v3, %v1797_v2 }
 0xa63   :  { %v1470_v32 = vpop.xlane.xlu0 %1469 }
 0xa64   :  { %4020 = vrcp.f32 %v1470_v32 }
 0xa67   :  { %v1473_v33 = vpop.xlane.xlu0 %1472 }
 0xa68   :  { %4022 = vrcp.f32 %v1473_v33 }
 0xa6b   :  { %v1555_v34 = vpop.permute.xlu0 %1554 }
 0xa6c   :  { %3795 = vmatpush3.msra.mxu1 %v1555_v34 }
 0xa6d   :  { %3940 = vmatprep.subr.bf16.mxu1 %v3939_v4 }
 0xa6e   :  { %v4021_v35 = vpop.eup %4020 }
 0xa6f   :  { %v1476_v36 = vmul.f32 %v4021_v35, %v4017_v12  ;;  %v1641_v44 = vpop.permute.xlu0 %1640 }
 0xa70   :  { %v1657_v47 = vsel %vm1656_vm4, %v1654_v45, %v1641_v44 }
 0xa71   :  { %3792 = vmatmul.mubr.msk.f32.vlgmr.msra.gmra.mrb[14].mxu0 %vm298_vm2, %v1476_v36 }
 0xa72   :  { %v4023_v37 = vpop.eup %4022  ;;  %3934 = vmatpush3.bf16.msra.mxu0 %v3931_v11 }
 0xa73   :  { %v1477_v38 = vmul.f32 %v4023_v37, %v4019_v29  ;;  %3936 = vmatprep.subr.bf16.mxu0 %v3935_v20 }
 0xa75   :  { %3797 = vmatmul.mubr.msk.f32.vlgmr.msra.gmra.mrb[16].mxu1 %vm298_vm2, %v1477_v38  ;;  %v3577_v38 = vld [vmem:[#allocation16] ss:$0 sm:$0xff] }
 0xa76   :  { %3942 = vmatpush3.bf16.msra.mxu1 %v3939_v4  ;;  %3818 = vmatprep.mubr.msk.f32.mxu1 %vm213_vm0, %v196_v16 }
 0xa77   :  { %3944 = vmatprep.subr.bf16.mxu1 %v3943_v15  ;;  %3938 = vmatpush3.bf16.msra.mxu0 %v3935_v20 }
 0xa78   :  { %3821 = vmatprep.subr.mxu0 %v4359_v8 }
 0xa7a   :  { %3946 = vmatpush3.bf16.msra.mxu1 %v3943_v15 }
 0xa7b   :  { %3826 = vmatprep.subr.mxu1 %v4359_v8 }
 0xa7d   :  { %3819 = vmatmul.mubr.msk.f32.vlgmr.msra.gmra.mrb[18].mxu1 %vm213_vm0, %v197_v21 }
 0xa7e   :  { %3828 = vmatprep.mubr.msk.f32.mxu1 %vm4360_vm1, %v4359_v8 }
 0xb44   :  { %v1550_v39 = vpop.f32.mrb[14].mxu0 }
 0xb45   :  { %1648 = vrot.lane.b32.xlu0 %v1550_v39, %s4373_s0  ;;  %v3793_v13 = vpop.f32.mrb[15].mxu0 }
 0xb48   :  { %v1626_v40 = vpop.f32.mrb[16].mxu1 }
 0xb49   :  { %1650 = vrot.lane.b32.xlu1 %v1626_v40, %s4373_s0  ;;  %v3798_v41 = vpop.f32.mrb[17].mxu1 }
 0xb50   :  { %v3820_v39 = vpop.f32.mrb[18].mxu1 }
 0xb51   :  { %v4844_v13 = vadd.f32 %v3820_v39, %v3577_v38  ;;  %v1880_v40 = vpop.f32.mrb[19].mxu1 }
 0xb53   :  { %3827 = vmatpush3.xpose.msk.msra.mxu1 %vm298_vm2, %v4844_v13 }
 0xb54   :  { %3836 = vmatprep.subr.mxu1 %v4359_v8 }
 0xbb7   :  { %v1649_v48 = vpop.permute.xlu0 %1648 }
 0xbb8   :  { %v1660_v49 = vsel %vm1659_vm3, %v1657_v47, %v1649_v48 }
 0xbb9   :  { %v1662_v51 = vsel %vm213_vm0, %v1660_v49, 0.0 }
 0xbba   :  { %1663 = vadd.xlane.f32.xlu0 %v1662_v51  ;;  %v4868_v51 = vld [vmem:[#allocation8] sm:$0xff] }
 0xbbb   :  { %v1651_v55 = vpop.permute.xlu1 %1650 }
 0xbbc   :  { %v1661_v56 = vsel %vm1659_vm3, %v1658_v54, %v1651_v55 }
 0xbbd   :  { %v1665_v50 = vsel %vm213_vm0, %v1661_v56, 0.0 }
 0xbbe   :  { %1666 = vadd.xlane.f32.xlu1 %v1665_v50 }
 0xc47   :  { %v1664_v57 = vpop.xlane.xlu0 %1663 }
 0xc48   :  { %v1669_v58 = vmul.f32 0.03125, %v1664_v57 }
 0xc4a   :  { %v1671_v59 = vsub.f32 %v1660_v49, %v1669_v58 }
 0xc4b   :  { %v1667_v60 = vpop.xlane.xlu1 %1666 }
 0xc4c   :  { %v1670_v61 = vmul.f32 0.03125, %v1667_v60  ;;  %v1673_v62 = vmul.f32 %v1671_v59, %v1671_v59 }
 0xc4e   :  { %v1672_v63 = vsub.f32 %v1661_v56, %v1670_v61  ;;  %v1675_v0 = vsel %vm213_vm0, %v1673_v62, 0.0 }
 0xc4f   :  { %1676 = vadd.xlane.f32.xlu0 %v1675_v0 }
 0xc50   :  { %v1674_v52 = vmul.f32 %v1672_v63, %v1672_v63 }
 0xc52   :  { %v1678_v1 = vsel %vm213_vm0, %v1674_v52, 0.0 }
 0xc53   :  { %1679 = vadd.xlane.f32.xlu0 %v1678_v1 }
 0xcdc   :  { %v1677_v23 = vpop.xlane.xlu0 %1676 }
 0xcdd   :  { %v1681_v17 = vmul.f32 0.03125, %v1677_v23 }
 0xcdf   :  { %v1683_v24 = vadd.f32 1e-05, %v1681_v17 }
 0xce0   :  { %v1680_v25 = vpop.xlane.xlu0 %1679 }
 0xce1   :  { %4024 = vrsqrt.f32 %v1683_v24  ;;  %v1682_v26 = vmul.f32 0.03125, %v1680_v25 }
 0xce3   :  { %v1684_v22 = vadd.f32 1e-05, %v1682_v26 }
 0xce5   :  { %4026 = vrsqrt.f32 %v1684_v22 }
 0xceb   :  { %v4025_v27 = vpop.eup %4024 }
 0xcec   :  { %v1687_v12 = vmul.f32 %v4025_v27, %v1671_v59 }
 0xcee   :  { %v1694_v29 = vmul.f32 %v3572_v28, %v1687_v12 }
 0xcef   :  { %v4027_v31 = vpop.eup %4026 }
 0xcf0   :  { %v1688_v32 = vmul.f32 %v4027_v31, %v1672_v63  ;;  %v1701_v33 = vadd.f32 %v3573_v30, %v1694_v29 }
 0xcf2   :  { %v1695_v34 = vmul.f32 %v3572_v28, %v1688_v32  ;;  %v4833_v35 = vadd.f32 %v1701_v33, %v4639_v5  ;;  %v4846_v5 = vadd.f32 %v3577_v38, %v1880_v40 }
 0xcf4   :  { %v1702_v36 = vadd.f32 %v3573_v30, %v1695_v34  ;;  %3807 = vmatprep.mubr.msk.f32.mxu0 %vm213_vm0, %v4833_v35 }
 0xcf6   :  { %v4838_v37 = vadd.f32 %v1702_v36, %v4643_v7  ;;  %v3574_v7 = vld [vmem:[#allocation13] ss:$0 sm:$0xff] }
 0xcf8   :  { %3808 = vmatmul.mubr.msk.f32.vlgmr.msra.gmra.mrb[16].mxu0 %vm213_vm0, %v4838_v37 }
 0xcf9   :  { %3823 = vmatprep.mubr.msk.f32.mxu0 %vm4360_vm1, %v4359_v8  ;;  %3822 = vmatpush3.xpose.msk.msra.mxu0 %vm298_vm2, %v4846_v5 }
 0xcfa   :  { %3831 = vmatprep.subr.mxu0 %v4359_v8 }
 0xdcb   :  { %v3809_v41 = vpop.f32.mrb[16].mxu0 }
 0xdcc   :  { %v4854_v42 = vadd.f32 %v3809_v41, %v3574_v7  ;;  %v1788_v43 = vpop.f32.mrb[17].mxu0 }
 0xdcd   :  { %v4856_v44 = vadd.f32 %v3574_v7, %v1788_v43 }
 0xdce   :  { %3829 = vmatmul.mubr.msk.f32.vlgmr.msra.gmra.mrb[20].mxu1 %vm298_vm2, %v4854_v42 }
 0xdcf   :  { %3824 = vmatmul.mubr.msk.f32.vlgmr.msra.gmra.mrb[18].mxu0 %vm298_vm2, %v4856_v44  ;;  %3838 = vmatprep.mubr.msk.f32.mxu1 %vm4360_vm1, %v4359_v8 }
 0xdd0   :  { %3833 = vmatprep.mubr.msk.f32.mxu0 %vm4360_vm1, %v4359_v8 }
 0xea1   :  { %v2037_v45 = vpop.f32.mrb[20].mxu1 }
 0xea2   :  { %v2042_v47 = vmul.f32 0.35355338, %v2037_v45  ;;  %v1961_v48 = vpop.f32.mrb[18].mxu0  ;;  %v3830_v49 = vpop.f32.mrb[21].mxu1 }
 0xea3   :  { %v2041_v53 = vmul.f32 0.35355338, %v1961_v48  ;;  %v3825_v54 = vpop.f32.mrb[19].mxu0 }
 0xea4   :  { %v2044_v55 = vadd.f32 %v2042_v47, %v4866_v46 }
 0xea5   :  { %v2043_v56 = vadd.f32 %v2041_v53, %v4868_v51 }
 0xea6   :  { %v2048_v50 = vsel %vm298_vm2, %v2044_v55, -inf }
 0xea7   :  { %2049 = vmax.xlane.f32.xlu0 %v2048_v50  ;;  %v2045_v57 = vsel %vm298_vm2, %v2043_v56, -inf }
 0xea8   :  { %2046 = vmax.xlane.f32.xlu1 %v2045_v57 }
 0xeb9   :  { %2067 = vrot.lane.b32.xlu1 %v4846_v5, %s4361_s22 }
 0xebd   :  { %2143 = vrot.lane.b32.xlu0 %v4844_v13, %s4361_s22  ;;  %2221 = vrot.lane.b32.xlu1 %v4846_v5, %s4364_s20 }
 0xec1   :  { %2299 = vrot.lane.b32.xlu1 %v4844_v13, %s4364_s20 }
 0xf34   :  { %v2050_v58 = vpop.xlane.xlu0 %2049 }
 0xf35   :  { %v2052_v59 = vsub.f32 %v2044_v55, %v2050_v58  ;;  %v2047_v60 = vpop.xlane.xlu1 %2046 }
 0xf36   :  { %v2051_v61 = vsub.f32 %v2043_v56, %v2047_v60 }
 0xf37   :  { %v2055_v62 = vmul.f32 1.442695, %v2052_v59 }
 0xf38   :  { %v2053_v63 = vmul.f32 1.442695, %v2051_v61  ;;  %v2144_v0 = vpop.permute.xlu0 %2143 }
 0xf39   :  { %4028 = vpow2.f32 %v2055_v62  ;;  %3837 = vmatpush3.msra.mxu1 %v2144_v0  ;;  %v2068_v52 = vpop.permute.xlu1 %2067 }
 0xf3a   :  { %4030 = vpow2.f32 %v2053_v63  ;;  %3832 = vmatpush3.msra.mxu0 %v2068_v52  ;;  %3846 = vmatprep.subr.mxu1 %v4359_v8 }
 0xf3b   :  { %3841 = vmatprep.subr.mxu0 %v4359_v8 }
 0xf3d   :  { %v2222_v6 = vpop.permute.xlu1 %2221 }
 0xf41   :  { %v2300_v9 = vpop.permute.xlu1 %2299 }
 0xf43   :  { %v4029_v1 = vpop.eup %4028 }
 0xf44   :  { %v4031_v2 = vpop.eup %4030  ;;  %v2060_v3 = vsel %vm298_vm2, %v4029_v1, 0.0 }
 0xf45   :  { %2061 = vadd.xlane.f32.xlu0 %v2060_v3  ;;  %v2057_v4 = vsel %vm298_vm2, %v4031_v2, 0.0 }
 0xf46   :  { %2058 = vadd.xlane.f32.xlu1 %v2057_v4 }
 0xf57   :  { %2297 = vrot.lane.b32.xlu1 %v4854_v42, %s4364_s20 }
 0xf5b   :  { %2219 = vrot.lane.b32.xlu0 %v4856_v44, %s4364_s20 }
 0xfd2   :  { %v2062_v10 = vpop.xlane.xlu0 %2061 }
 0xfd3   :  { %4032 = vrcp.f32 %v2062_v10  ;;  %v2059_v11 = vpop.xlane.xlu1 %2058 }
 0xfd4   :  { %4034 = vrcp.f32 %v2059_v11 }
 0xfd6   :  { %v2220_v20 = vpop.permute.xlu0 %2219 }
 0xfd7   :  { %v2298_v19 = vpop.permute.xlu1 %2297 }
 0xfdd   :  { %v4033_v14 = vpop.eup %4032 }
 0xfde   :  { %v4035_v15 = vpop.eup %4034  ;;  %v2066_v16 = vmul.f32 %v4033_v14, %v4029_v1 }
 0xfdf   :  { %v2065_v18 = vmul.f32 %v4035_v15, %v4031_v2 }
 0xfe0   :  { %3839 = vmatmul.mubr.msk.f32.vlgmr.msra.gmra.mrb[22].mxu1 %vm298_vm2, %v2066_v16 }
 0xfe1   :  { %3847 = vmatpush3.xpose.msk.msra.mxu1 %vm298_vm2, %v2300_v9  ;;  %3834 = vmatmul.mubr.msk.f32.vlgmr.msra.gmra.mrb[20].mxu0 %vm298_vm2, %v2065_v18 }
 0xfe2   :  { %3842 = vmatpush3.xpose.msk.msra.mxu0 %vm298_vm2, %v2222_v6  ;;  %3848 = vmatprep.mubr.msk.f32.mxu1 %vm4360_vm1, %v4359_v8 }
 0xfe3   :  { %3843 = vmatprep.mubr.msk.f32.mxu0 %vm4360_vm1, %v4359_v8  ;;  %3851 = vmatprep.subr.mxu0 %v4359_v8 }
 0xfe4   :  { %3849 = vmatmul.mubr.msk.f32.vlgmr.msra.gmra.mrb[24].mxu1 %vm298_vm2, %v2298_v19  ;;  %3856 = vmatprep.subr.mxu1 %v4359_v8 }
 0xfe5   :  { %3844 = vmatmul.mubr.msk.f32.vlgmr.msra.gmra.mrb[22].mxu0 %vm298_vm2, %v2220_v20  ;;  %3858 = vmatprep.mubr.msk.f32.mxu1 %vm4360_vm1, %v4359_v8 }
 0xfe6   :  { %3853 = vmatprep.mubr.msk.f32.mxu0 %vm4360_vm1, %v4359_v8 }
0x10b3   :  { %v4906_v21 = vpop.f32.mrb[22].mxu1 }
0x10b4   :  { %v4908_v23 = vpop.f32.mrb[20].mxu0  ;;  %v3840_v17 = vpop.f32.mrb[23].mxu1 }
0x10b5   :  { %v3835_v24 = vpop.f32.mrb[21].mxu0 }
0x10b7   :  { %v2371_v25 = vpop.f32.mrb[24].mxu1 }
0x10b8   :  { %v2376_v26 = vmul.f32 0.35355338, %v2371_v25  ;;  %v2293_v22 = vpop.f32.mrb[22].mxu0  ;;  %v3850_v27 = vpop.f32.mrb[25].mxu1 }
0x10b9   :  { %v2375_v28 = vmul.f32 0.35355338, %v2293_v22  ;;  %v3845_v12 = vpop.f32.mrb[23].mxu0 }
0x10ba   :  { %v2378_v30 = vadd.f32 %v2376_v26, %v4866_v46 }
0x10bb   :  { %v2377_v29 = vadd.f32 %v2375_v28, %v4868_v51 }
0x10bc   :  { %v2382_v31 = vsel %vm298_vm2, %v2378_v30, -inf }
0x10bd   :  { %2383 = vmax.xlane.f32.xlu1 %v2382_v31  ;;  %v2379_v32 = vsel %vm298_vm2, %v2377_v29, -inf }
0x10be   :  { %2380 = vmax.xlane.f32.xlu0 %v2379_v32 }
0x10ce   :  { %2401 = vrot.lane.b32.xlu1 %v4846_v5, %s4363_s24 }
0x10d2   :  { %2555 = vrot.lane.b32.xlu1 %v4846_v5, %s4367_s25 }
0x10d4   :  { %2477 = vrot.lane.b32.xlu0 %v4844_v13, %s4363_s24 }
0x10d6   :  { %2633 = vrot.lane.b32.xlu1 %v4844_v13, %s4367_s25 }
0x10da   :  { %2631 = vrot.lane.b32.xlu1 %v4854_v42, %s4367_s25 }
0x114a   :  { %v2384_v33 = vpop.xlane.xlu1 %2383 }
0x114b   :  { %v2386_v34 = vsub.f32 %v2378_v30, %v2384_v33  ;;  %v2381_v36 = vpop.xlane.xlu0 %2380 }
0x114c   :  { %v2385_v38 = vsub.f32 %v2377_v29, %v2381_v36 }
0x114d   :  { %v2389_v39 = vmul.f32 1.442695, %v2386_v34 }
0x114e   :  { %v2387_v40 = vmul.f32 1.442695, %v2385_v38  ;;  %v2402_v7 = vpop.permute.xlu1 %2401 }
0x114f   :  { %4036 = vpow2.f32 %v2389_v39  ;;  %3852 = vmatpush3.msra.mxu0 %v2402_v7  ;;  %v2478_v41 = vpop.permute.xlu0 %2477 }
0x1150   :  { %3857 = vmatpush3.msra.mxu1 %v2478_v41  ;;  %3861 = vmatprep.subr.mxu0 %v4359_v8  ;;  %4038 = vpow2.f32 %v2387_v40 }
0x1151   :  { %3866 = vmatprep.subr.mxu1 %v4359_v8 }
0x1152   :  { %v2556_v54 = vpop.permute.xlu1 %2555 }
0x1156   :  { %v2634_v56 = vpop.permute.xlu1 %2633 }
0x1159   :  { %v4037_v43 = vpop.eup %4036 }
0x115a   :  { %v2394_v45 = vsel %vm298_vm2, %v4037_v43, 0.0  ;;  %v4039_v47 = vpop.eup %4038  ;;  %v2632_v59 = vpop.permute.xlu1 %2631 }
0x115b   :  { %2395 = vadd.xlane.f32.xlu0 %v2394_v45  ;;  %v2391_v48 = vsel %vm298_vm2, %v4039_v47, 0.0 }
0x115f   :  { %2392 = vadd.xlane.f32.xlu0 %v2391_v48 }
0x1175   :  { %2553 = vrot.lane.b32.xlu0 %v4856_v44, %s4367_s25 }
0x11e8   :  { %v2396_v49 = vpop.xlane.xlu0 %2395 }
0x11e9   :  { %4040 = vrcp.f32 %v2396_v49 }
0x11ec   :  { %v2393_v53 = vpop.xlane.xlu0 %2392 }
0x11ed   :  { %4042 = vrcp.f32 %v2393_v53 }
0x11f0   :  { %v2554_v60 = vpop.permute.xlu0 %2553 }
0x11f3   :  { %v4041_v55 = vpop.eup %4040 }
0x11f4   :  { %v2400_v50 = vmul.f32 %v4041_v55, %v4037_v43 }
0x11f6   :  { %3859 = vmatmul.mubr.msk.f32.vlgmr.msra.gmra.mrb[26].mxu1 %vm298_vm2, %v2400_v50 }
0x11f7   :  { %v4043_v57 = vpop.eup %4042  ;;  %3867 = vmatpush3.xpose.msk.msra.mxu1 %vm298_vm2, %v2634_v56  ;;  %3868 = vmatprep.mubr.msk.f32.mxu1 %vm4360_vm1, %v4359_v8 }
0x11f8   :  { %v2399_v58 = vmul.f32 %v4043_v57, %v4039_v47  ;;  %3876 = vmatprep.subr.mxu1 %v4359_v8 }
0x11fa   :  { %3854 = vmatmul.mubr.msk.f32.vlgmr.msra.gmra.mrb[24].mxu0 %vm298_vm2, %v2399_v58  ;;  %3869 = vmatmul.mubr.msk.f32.vlgmr.msra.gmra.mrb[28].mxu1 %vm298_vm2, %v2632_v59 }
0x11fb   :  { %3862 = vmatpush3.xpose.msk.msra.mxu0 %vm298_vm2, %v2556_v54  ;;  %3863 = vmatprep.mubr.msk.f32.mxu0 %vm4360_vm1, %v4359_v8 }
0x11fc   :  { %3871 = vmatprep.subr.mxu0 %v4359_v8  ;;  %3878 = vmatprep.mubr.msk.f32.mxu1 %vm4360_vm1, %v4359_v8 }
0x11fe   :  { %3864 = vmatmul.mubr.msk.f32.vlgmr.msra.gmra.mrb[26].mxu0 %vm298_vm2, %v2554_v60 }
0x11ff   :  { %3873 = vmatprep.mubr.msk.f32.mxu0 %vm4360_vm1, %v4359_v8 }
0x12c9   :  { %v4946_v61 = vpop.f32.mrb[26].mxu1 }
0x12ca   :  { %v3860_v62 = vpop.f32.mrb[27].mxu1 }
0x12cd   :  { %v4948_v63 = vpop.f32.mrb[24].mxu0  ;;  %v2705_v0 = vpop.f32.mrb[28].mxu1 }
0x12ce   :  { %v2710_v52 = vmul.f32 0.35355338, %v2705_v0  ;;  %v3855_v1 = vpop.f32.mrb[25].mxu0  ;;  %v3870_v2 = vpop.f32.mrb[29].mxu1 }
0x12d0   :  { %v2712_v3 = vadd.f32 %v2710_v52, %v4866_v46 }
0x12d1   :  { %v2627_v4 = vpop.f32.mrb[26].mxu0 }
0x12d2   :  { %v2709_v6 = vmul.f32 0.35355338, %v2627_v4  ;;  %v3865_v9 = vpop.f32.mrb[27].mxu0  ;;  %v2716_v10 = vsel %vm298_vm2, %v2712_v3, -inf }
0x12d3   :  { %2717 = vmax.xlane.f32.xlu1 %v2716_v10 }
0x12d4   :  { %v2711_v11 = vadd.f32 %v2709_v6, %v4868_v51 }
0x12d6   :  { %v2713_v14 = vsel %vm298_vm2, %v2711_v11, -inf }
0x12d7   :  { %2714 = vmax.xlane.f32.xlu0 %v2713_v14 }
0x12e4   :  { %2735 = vrot.lane.b32.xlu1 %v4846_v5, %s4366_s23 }
0x12e8   :  { %2889 = vrot.lane.b32.xlu1 %v4846_v5, %s4370_s7 }
0x12ec   :  { %2967 = vrot.lane.b32.xlu1 %v4844_v13, %s4370_s7 }
0x12ed   :  { %2811 = vrot.lane.b32.xlu0 %v4844_v13, %s4366_s23 }
0x12f0   :  { %2965 = vrot.lane.b32.xlu1 %v4854_v42, %s4370_s7 }
0x1360   :  { %v2718_v15 = vpop.xlane.xlu1 %2717 }
0x1361   :  { %v2720_v16 = vsub.f32 %v2712_v3, %v2718_v15 }
0x1363   :  { %v2723_v18 = vmul.f32 1.442695, %v2720_v16 }
0x1364   :  { %v2736_v19 = vpop.permute.xlu1 %2735  ;;  %v2715_v20 = vpop.xlane.xlu0 %2714 }
0x1365   :  { %4044 = vpow2.f32 %v2723_v18  ;;  %v2719_v17 = vsub.f32 %v2711_v11, %v2715_v20  ;;  %3872 = vmatpush3.msra.mxu0 %v2736_v19 }
0x1366   :  { %3881 = vmatprep.subr.mxu0 %v4359_v8 }
0x1367   :  { %v2721_v24 = vmul.f32 1.442695, %v2719_v17 }
0x1368   :  { %v2812_v25 = vpop.permute.xlu0 %2811  ;;  %v2890_v30 = vpop.permute.xlu1 %2889 }
0x1369   :  { %4046 = vpow2.f32 %v2721_v24  ;;  %3877 = vmatpush3.msra.mxu1 %v2812_v25 }
0x136a   :  { %3886 = vmatprep.subr.mxu1 %v4359_v8 }
0x136c   :  { %v2968_v31 = vpop.permute.xlu1 %2967 }
0x136f   :  { %v4045_v26 = vpop.eup %4044 }
0x1370   :  { %v2728_v22 = vsel %vm298_vm2, %v4045_v26, 0.0 }
0x1371   :  { %2729 = vadd.xlane.f32.xlu0 %v2728_v22 }
0x1373   :  { %v4047_v42 = vpop.eup %4046 }
0x1374   :  { %v2725_v27 = vsel %vm298_vm2, %v4047_v42, 0.0 }
0x1375   :  { %2726 = vadd.xlane.f32.xlu0 %v2725_v27 }
0x138b   :  { %2887 = vrot.lane.b32.xlu0 %v4856_v44, %s4370_s7  ;;  %v2966_v44 = vpop.permute.xlu1 %2965 }
0x13fe   :  { %v2730_v28 = vpop.xlane.xlu0 %2729 }
0x13ff   :  { %4048 = vrcp.f32 %v2730_v28 }
0x1402   :  { %v2727_v12 = vpop.xlane.xlu0 %2726 }
0x1403   :  { %4050 = vrcp.f32 %v2727_v12 }
0x1406   :  { %v2888_v36 = vpop.permute.xlu0 %2887 }
0x1409   :  { %v4049_v29 = vpop.eup %4048 }
0x140a   :  { %v2734_v32 = vmul.f32 %v4049_v29, %v4045_v26 }
0x140c   :  { %3879 = vmatmul.mubr.msk.f32.vlgmr.msra.gmra.mrb[30].mxu1 %vm298_vm2, %v2734_v32 }
0x140d   :  { %v4051_v33 = vpop.eup %4050  ;;  %3887 = vmatpush3.xpose.msk.msra.mxu1 %vm298_vm2, %v2968_v31  ;;  %3888 = vmatprep.mubr.msk.f32.mxu1 %vm4360_vm1, %v4359_v8 }
0x140e   :  { %v2733_v34 = vmul.f32 %v4051_v33, %v4047_v42  ;;  %3896 = vmatprep.subr.mxu1 %v4359_v8 }
0x1410   :  { %3874 = vmatmul.mubr.msk.f32.vlgmr.msra.gmra.mrb[28].mxu0 %vm298_vm2, %v2733_v34  ;;  %3889 = vmatmul.mubr.msk.f32.vlgmr.msra.gmra.mrb[32].mxu1 %vm298_vm2, %v2966_v44  ;;  %v3293_v44 = vld [vmem:[%s5082_s10] sm:$0xff] }
0x1411   :  { %3882 = vmatpush3.xpose.msk.msra.mxu0 %vm298_vm2, %v2890_v30  ;;  %3883 = vmatprep.mubr.msk.f32.mxu0 %vm4360_vm1, %v4359_v8 }
0x1412   :  { %3891 = vmatprep.subr.mxu0 %v4359_v8  ;;  %3898 = vmatprep.mubr.msk.f32.mxu1 %vm4360_vm1, %v4359_v8 }
0x1414   :  { %3884 = vmatmul.mubr.msk.f32.vlgmr.msra.gmra.mrb[30].mxu0 %vm298_vm2, %v2888_v36  ;;  %v3294_v36 = vld [vmem:[%s5082_s10 + $0x8] sm:$0xff] }
0x1415   :  { %3893 = vmatprep.mubr.msk.f32.mxu0 %vm4360_vm1, %v4359_v8 }
0x14df   :  { %v2883_v38 = vpop.f32.mrb[30].mxu1 }
0x14e0   :  { %v3880_v39 = vpop.f32.mrb[31].mxu1 }
0x14e1   :  { %v3295_v39 = vld [vmem:[%s5082_s10 + $0x10] sm:$0xff] }
0x14e3   :  { %v2807_v40 = vpop.f32.mrb[28].mxu0  ;;  %v3039_v7 = vpop.f32.mrb[32].mxu1 }
0x14e4   :  { %v3044_v41 = vmul.f32 0.35355338, %v3039_v7  ;;  %v3875_v43 = vpop.f32.mrb[29].mxu0  ;;  %v3890_v45 = vpop.f32.mrb[33].mxu1 }
0x14e5   :  { %v3388_v43 = vld [vmem:[#allocation19 + $0x8] sm:$0xff] }
0x14e6   :  { %v3046_v47 = vadd.f32 %v3044_v41, %v4866_v46  ;;  %v3387_v41 = vld [vmem:[#allocation19] sm:$0xff] }
0x14e7   :  { %v2961_v48 = vpop.f32.mrb[30].mxu0  ;;  %v3955_v45 = vpack.c.bf16 %v3388_v43, %v3387_v41 }
0x14e8   :  { %v3043_v49 = vmul.f32 0.35355338, %v2961_v48  ;;  %v3885_v53 = vpop.f32.mrb[31].mxu0  ;;  %v3050_v54 = vsel %vm298_vm2, %v3046_v47, -inf }
0x14e9   :  { %3051 = vmax.xlane.f32.xlu1 %v3050_v54 }
0x14ea   :  { %v3045_v55 = vadd.f32 %v3043_v49, %v4868_v51 }
0x14ec   :  { %v3047_v56 = vsel %vm298_vm2, %v3045_v55, -inf }
0x14ed   :  { %3048 = vmax.xlane.f32.xlu0 %v3047_v56 }
0x14fa   :  { %3069 = vrot.lane.b32.xlu1 %v4846_v5, %s4369_s27 }
0x14fe   :  { %3223 = vrot.lane.b32.xlu1 %v4948_v63, %s4349_s16 }
0x1502   :  { %3225 = vrot.lane.b32.xlu1 %v4946_v61, %s4349_s16 }
0x1506   :  { %3233 = vrot.lane.b32.xlu1 %v2883_v38, %s4372_s3  ;;  %v3947_v38 = vpack.c.bf16 %v3294_v36, %v3293_v44  ;;  %v3613_v36 = vld [vmem:[%s5086_s14 + $0x5] ss:$0 sm:$0xff] }
0x1576   :  { %v3052_v8 = vpop.xlane.xlu1 %3051 }
0x1577   :  { %v3054_v46 = vsub.f32 %v3046_v47, %v3052_v8  ;;  %v3604_v8 = vld [vmem:[%s5086_s14 + $0x2] ss:$0 sm:$0xff] }
0x1579   :  { %v3057_v50 = vmul.f32 1.442695, %v3054_v46 }
0x157a   :  { %v3070_v57 = vpop.permute.xlu1 %3069  ;;  %v3049_v58 = vpop.xlane.xlu0 %3048 }
0x157b   :  { %4052 = vpow2.f32 %v3057_v50  ;;  %v3053_v51 = vsub.f32 %v3045_v55, %v3049_v58  ;;  %3892 = vmatpush3.msra.mxu0 %v3070_v57  ;;  %v3605_v50 = vld [vmem:[%s5086_s14 + $0x3] ss:$0 sm:$0xff] }
0x157c   :  { %3948 = vmatprep.subr.bf16.mxu0 %v3947_v38 }
0x157d   :  { %v3055_v59 = vmul.f32 1.442695, %v3053_v51 }
0x157e   :  { %v3224_v11 = vpop.permute.xlu1 %3223 }
0x157f   :  { %4054 = vpow2.f32 %v3055_v59  ;;  %v3245_v25 = vsel %vm298_vm2, %v4908_v23, %v3224_v11 }
0x1582   :  { %v3226_v14 = vpop.permute.xlu1 %3225 }
0x1583   :  { %v3246_v16 = vsel %vm298_vm2, %v4906_v21, %v3226_v14 }
0x1585   :  { %v4053_v60 = vpop.eup %4052 }
0x1586   :  { %v3062_v5 = vsel %vm298_vm2, %v4053_v60, 0.0  ;;  %v3234_v15 = vpop.permute.xlu1 %3233 }
0x1587   :  { %3063 = vadd.xlane.f32.xlu0 %v3062_v5  ;;  %v3248_v18 = vsel %vm1656_vm4, %v3246_v16, %v3234_v15 }
0x1589   :  { %v4055_v62 = vpop.eup %4054 }
0x158a   :  { %v3059_v63 = vsel %vm298_vm2, %v4055_v62, 0.0 }
0x158b   :  { %3060 = vadd.xlane.f32.xlu0 %v3059_v63 }
0x15a1   :  { %3145 = vrot.lane.b32.xlu0 %v4844_v13, %s4369_s27  ;;  %s4374_s27 = smov [#allocation20]  }
0x15a2   :  { %s3528_s7 = sshll.u32 %s4374_s27, 4  ;;  %s3529_s7 = int_to_ptr.vmem [resolvable:$true] %s3528_s7 }
0x15a3   :  { %s4310_s26 = scalar_lea.vmem %s3529_s7, 256  ;;  %p4315_p5 = scmp.lt.s32.totalorder %s3529_s7, %s3529_s7 }
0x15a4   :  { %p4311_p4 = scmp.ne.s32.totalorder %s3529_s7, %s4310_s26  ;;  %p4316_p6 = scmp.lt.s32.totalorder %s4310_s26, %s4310_s26 }
0x15a5   :  { %3231 = vrot.lane.b32.xlu0 %v2807_v40, %s4372_s3  ;;  %v3296_v40 = vld [vmem:[%s5082_s10 + $0x18] sm:$0xff] }
0x15a6   :  { %v3951_v7 = vpack.c.bf16 %v3296_v40, %v3295_v39  ;;  %p4317_p7 = por %p4316_p6, %p4315_p5 }
0x15a8   :  { %p4318_p8 = pnand %p4317_p7, %p4311_p4 }
0x1614   :  { %v3064_v61 = vpop.xlane.xlu0 %3063 }
0x1615   :  { %4056 = vrcp.f32 %v3064_v61  ;;  %v3389_v61 = vld [vmem:[#allocation19 + $0x10] sm:$0xff] }
0x1618   :  { %v3061_v0 = vpop.xlane.xlu0 %3060 }
0x1619   :  { %4058 = vrcp.f32 %v3061_v0  ;;  %v3390_v0 = vld [vmem:[#allocation19 + $0x18] sm:$0xff] }
0x161c   :  { %v3146_v52 = vpop.permute.xlu0 %3145 }
0x161d   :  { %3897 = vmatpush3.msra.mxu1 %v3146_v52  ;;  %v3959_v52 = vpack.c.bf16 %v3390_v0, %v3389_v61 }
0x161e   :  { %3956 = vmatprep.subr.bf16.mxu1 %v3955_v45 }
0x161f   :  { %v4057_v1 = vpop.eup %4056 }
0x1620   :  { %v3068_v2 = vmul.f32 %v4057_v1, %v4053_v60  ;;  %v3232_v19 = vpop.permute.xlu0 %3231  ;;  %v3606_v1 = vld [vmem:[#allocation17] ss:$0 sm:$0xff] }
0x1621   :  { %v3247_v26 = vsel %vm1656_vm4, %v3245_v25, %v3232_v19 }
0x1622   :  { %3899 = vmatmul.mubr.msk.f32.vlgmr.msra.gmra.mrb[34].mxu1 %vm298_vm2, %v3068_v2 }
0x1623   :  { %v4059_v3 = vpop.eup %4058  ;;  %3958 = vmatpush3.bf16.msra.mxu1 %v3955_v45 }
0x1624   :  { %v3067_v4 = vmul.f32 %v4059_v3, %v4055_v62  ;;  %3960 = vmatprep.subr.bf16.mxu1 %v3959_v52 }
0x1626   :  { %3894 = vmatmul.mubr.msk.f32.vlgmr.msra.gmra.mrb[32].mxu0 %vm298_vm2, %v3067_v4 }
0x1627   :  { %3950 = vmatpush3.bf16.msra.mxu0 %v3947_v38  ;;  %3962 = vmatpush3.bf16.msra.mxu1 %v3959_v52 }
0x1628   :  { %3952 = vmatprep.subr.bf16.mxu0 %v3951_v7 }
0x162b   :  { %3954 = vmatpush3.bf16.msra.mxu0 %v3951_v7 }
0x16f5   :  { %v3217_v6 = vpop.f32.mrb[34].mxu1 }
0x16f6   :  { %3241 = vrot.lane.b32.xlu1 %v3217_v6, %s4373_s0  ;;  %v3900_v13 = vpop.f32.mrb[35].mxu1 }
0x16f9   :  { %v3141_v9 = vpop.f32.mrb[32].mxu0 }
0x16fa   :  { %3239 = vrot.lane.b32.xlu0 %v3141_v9, %s4373_s0  ;;  %v3895_v10 = vpop.f32.mrb[33].mxu0 }
0x1768   :  { %v3242_v20 = vpop.permute.xlu1 %3241 }
0x1769   :  { %v3250_v17 = vsel %vm1659_vm3, %v3248_v18, %v3242_v20 }
0x176a   :  { %v3254_v24 = vsel %vm213_vm0, %v3250_v17, 0.0 }
0x176b   :  { %3255 = vadd.xlane.f32.xlu1 %v3254_v24 }
0x176c   :  { %v3240_v22 = vpop.permute.xlu0 %3239 }
0x176d   :  { %v3249_v42 = vsel %vm1659_vm3, %v3247_v26, %v3240_v22 }
0x176e   :  { %v3251_v27 = vsel %vm213_vm0, %v3249_v42, 0.0 }
0x176f   :  { %3252 = vadd.xlane.f32.xlu0 %v3251_v27 }
0x17f8   :  { %v3256_v21 = vpop.xlane.xlu1 %3255 }
0x17f9   :  { %v3258_v28 = vmul.f32 0.03125, %v3256_v21 }
0x17fb   :  { %v3260_v29 = vsub.f32 %v3250_v17, %v3258_v28 }
0x17fc   :  { %v3253_v12 = vpop.xlane.xlu0 %3252 }
0x17fd   :  { %v3257_v30 = vmul.f32 0.03125, %v3253_v12  ;;  %v3262_v34 = vmul.f32 %v3260_v29, %v3260_v29 }
0x17ff   :  { %v3259_v31 = vsub.f32 %v3249_v42, %v3257_v30  ;;  %v3266_v23 = vsel %vm213_vm0, %v3262_v34, 0.0 }
0x1801   :  { %v3261_v32 = vmul.f32 %v3259_v31, %v3259_v31 }
0x1803   :  { %v3263_v33 = vsel %vm213_vm0, %v3261_v32, 0.0 }
0x1804   :  { %3264 = vadd.xlane.f32.xlu0 %v3263_v33  ;;  %v3612_v33 = vld [vmem:[%s5086_s14 + $0x4] ss:$0 sm:$0xff] }
0x1808   :  { %3267 = vadd.xlane.f32.xlu0 %v3266_v23 }
0x1891   :  { %v3265_v47 = vpop.xlane.xlu0 %3264 }
0x1892   :  { %v3269_v48 = vmul.f32 0.03125, %v3265_v47 }
0x1894   :  { %v3271_v49 = vadd.f32 1e-05, %v3269_v48 }
0x1895   :  { %v3268_v53 = vpop.xlane.xlu0 %3267 }
0x1896   :  { %4060 = vrsqrt.f32 %v3271_v49  ;;  %v3270_v54 = vmul.f32 0.03125, %v3268_v53 }
0x1898   :  { %v3272_v55 = vadd.f32 1e-05, %v3270_v54 }
0x189a   :  { %4062 = vrsqrt.f32 %v3272_v55 }
0x18a0   :  { %v4061_v56 = vpop.eup %4060 }
0x18a1   :  { %v3275_v46 = vmul.f32 %v4061_v56, %v3259_v31 }
0x18a3   :  { %v3282_v57 = vmul.f32 %v3604_v8, %v3275_v46 }
0x18a4   :  { %v4063_v58 = vpop.eup %4062 }
0x18a5   :  { %v3276_v51 = vmul.f32 %v4063_v58, %v3260_v29  ;;  %v3289_v59 = vadd.f32 %v3605_v50, %v3282_v57 }
0x18a7   :  { %v3283_v60 = vmul.f32 %v3604_v8, %v3276_v51  ;;  %v3291_v5 = vadd.f32 %v3289_v59, %v4833_v35  ;;  %v3609_v35 = vld [vmem:[%s5085_s13] ss:$0 sm:$0xff] }
0x18a9   :  { %v3290_v62 = vadd.f32 %v3605_v50, %v3283_v60  ;;  %3909 = vmatprep.mubr.msk.f32.mxu0 %vm213_vm0, %v3291_v5 }
0x18ab   :  { %v3292_v63 = vadd.f32 %v3290_v62, %v4838_v37 }
0x18ad   :  { %3910 = vmatmul.mubr.msk.f32.vlgmr.msra.gmra.mrb[34].mxu0 %vm213_vm0, %v3292_v63 }
0x1980   :  { %v3911_v2 = vpop.f32.mrb[34].mxu0 }
0x1981   :  { %v3382_v3 = vadd.f32 %v3911_v2, %v3606_v1  ;;  %v3376_v4 = vpop.f32.mrb[35].mxu0 }
0x1982   :  { %v3377_v6 = vadd.f32 %v3606_v1, %v3376_v4 }
0x1983   :  { %v3386_v9 = vmax.f32 %v3382_v3, 0.0 }
0x1984   :  { %v3385_v13 = vmax.f32 %v3377_v6, 0.0 }
0x1986   :  { %3920 = vmatprep.mubr.msk.f32.mxu1 %vm213_vm0, %v3385_v13 }
0x1987   :  { %3921 = vmatmul.mubr.msk.f32.vlgmr.msra.gmra.mrb[36].mxu1 %vm213_vm0, %v3386_v9 }
0x1a5a   :  { %v3922_v37 = vpop.f32.mrb[36].mxu1 }
0x1a5b   :  { %v3476_v10 = vadd.f32 %v3922_v37, %v3609_v35  ;;  %v3470_v11 = vpop.f32.mrb[37].mxu1 }
0x1a5c   :  { %v3471_v14 = vadd.f32 %v3609_v35, %v3470_v11 }
0x1a5d   :  { %v3482_v15 = vsel %vm213_vm0, %v3476_v10, 0.0 }
0x1a5e   :  { %3483 = vadd.xlane.f32.xlu0 %v3482_v15  ;;  %v3479_v16 = vsel %vm213_vm0, %v3471_v14, 0.0 }
0x1a5f   :  { %3480 = vadd.xlane.f32.xlu1 %v3479_v16 }
0x1aeb   :  { %v3484_v18 = vpop.xlane.xlu0 %3483 }
0x1aec   :  { %v3486_v19 = vmul.f32 0.03125, %v3484_v18  ;;  %v3481_v20 = vpop.xlane.xlu1 %3480 }
0x1aed   :  { %v3485_v17 = vmul.f32 0.03125, %v3481_v20 }
0x1aee   :  { %v3488_v24 = vsub.f32 %v3476_v10, %v3486_v19 }
0x1aef   :  { %v3487_v25 = vsub.f32 %v3471_v14, %v3485_v17 }
0x1af0   :  { %v3490_v26 = vmul.f32 %v3488_v24, %v3488_v24 }
0x1af1   :  { %v3489_v22 = vmul.f32 %v3487_v25, %v3487_v25 }
0x1af2   :  { %v3494_v42 = vsel %vm213_vm0, %v3490_v26, 0.0 }
0x1af3   :  { %3495 = vadd.xlane.f32.xlu0 %v3494_v42  ;;  %v3491_v27 = vsel %vm213_vm0, %v3489_v22, 0.0 }
0x1af4   :  { %3492 = vadd.xlane.f32.xlu1 %v3491_v27 }
0x1b80   :  { %v3496_v21 = vpop.xlane.xlu0 %3495 }
0x1b81   :  { %v3498_v28 = vmul.f32 0.03125, %v3496_v21  ;;  %v3493_v12 = vpop.xlane.xlu1 %3492 }
0x1b82   :  { %v3497_v30 = vmul.f32 0.03125, %v3493_v12 }
0x1b83   :  { %v3500_v29 = vadd.f32 1e-05, %v3498_v28 }
0x1b84   :  { %v3499_v31 = vadd.f32 1e-05, %v3497_v30 }
0x1b85   :  { %4064 = vrsqrt.f32 %v3500_v29 }
0x1b86   :  { %4066 = vrsqrt.f32 %v3499_v31 }
0x1b8f   :  { %v4065_v32 = vpop.eup %4064 }
0x1b90   :  { %v4067_v34 = vpop.eup %4066  ;;  %v3504_v23 = vmul.f32 %v4065_v32, %v3488_v24 }
0x1b91   :  { %v3503_v44 = vmul.f32 %v4067_v34, %v3487_v25 }
0x1b92   :  { %v3511_v38 = vmul.f32 %v3612_v33, %v3504_v23 }
0x1b93   :  { %v3510_v39 = vmul.f32 %v3612_v33, %v3503_v44 }
0x1b94   :  { %v3518_v40 = vadd.f32 %v3613_v36, %v3511_v38 }
0x1b95   :  { %v3517_v7 = vadd.f32 %v3613_v36, %v3510_v39 }
0x1b96   :  { %v3520_v41 = vadd.f32 %v3518_v40, %v3292_v63 }
0x1b97   :  { %v3519_v43 = vadd.f32 %v3517_v7, %v3291_v5 }
0x1b98   :  { %3522 = vst.msk [vmem:[#allocation20 + $0x8] sm:$0xff] %vm213_vm0, %v3520_v41 }
0x1b99   :  { %3521 = vst.msk [vmem:[#allocation20] sm:$0xff] %vm213_vm0, %v3519_v43 }
0x1b9a   :  { %4321 = shalt.err (!%p4318_p8)
}
0x1b9b   :  { %s4322_s0 = scalar_lea.hbm %s5087_s15, 256 }
0x1b9c   :  { %p4323_p9 = scmp.ne.s32.totalorder %s5087_s15, %s4322_s0  ;;  %p4326_p10 = scmp.lt.u32.totalorder %s4322_s0, %s5087_s15 }
0x1b9e   :  { %p4328_p11 = pnand %p4326_p10, %p4323_p9 }
0x1ba0   :  { %4331 = shalt.err (!%p4328_p11)
}
0x1ba1   :  { %3534 = dma.vmem_to_hbm [thread:$0]  %s3529_s7, 256, %s5087_s15, [#allocation4], %s4348_s30, %s4348_s30, %s4349_s16  }
0x1ba2   :  { %4344 = dma.done.wait [#allocation4], 256  }
0x1ba3   :  { %4345 = vsyncadd [#allocation4], 4294967040 }
0x1ba4   :  { %3538 = vsyncpa [#allocation3], 1 }
0x1ba5   :  { %3539 = vsyncpa [#allocation6], 1 }
0x1ba6   :  { %3540 = vsyncpa [#allocation9], 1 }
0x1ba7   :  { %3541 = vsyncpa [#allocation12], 1 }
0x1ba8   :  { %3542 = vsyncpa [#allocation15], 1 }
0x1ba9   :  { %3543 = vsyncpa [#allocation18], 1 }
0x1baa   :  { %3544 = vsyncpa [#allocation4], 1 }

</bundles_post_ra>
